<compile_context>
chip_gen: v7x
topology: tpu7x:2x2x1
jax: 0.10.0
libtpu: 0.0.40
codegen_flags: <defaults>
</compile_context>

<pallas_src>
import functools

import jax
import jax.numpy as jnp
from jax.experimental import pallas as pl
from jax.experimental.pallas import tpu as pltpu

HIDDEN_PAD = 128  # lane-dense padded hidden width


def _tile(dim, preferred, align):
    """Largest multiple of `align` <= preferred that divides dim, else full dim."""
    if dim <= preferred or dim % align != 0:
        return dim
    t = (min(preferred, dim) // align) * align
    while dim % t != 0:
        t -= align
    return t


def _pad_to(a, shape):
    out = jnp.zeros(shape, a.dtype)
    return out.at[tuple(slice(0, s) for s in a.shape)].set(a)


# ---------------------------------------------------------------------------
# Kernel 1: one fused GCN layer
#   acc = sum_k A[i, k] @ H[k]                (tiled, bf16 in / f32 accumulate)
#   epilogue (k == last): t = acc (@W_post) (+b) (relu) (@W_next) -> out[i]
# ---------------------------------------------------------------------------
def _agg_kernel(a_ref, h_ref, *rest, has_w_post, has_bias, has_w_next, apply_relu):
    *param_refs, o_ref, acc_ref = rest
    pi = 0
    w_post_ref = b_ref = w_next_ref = None
    if has_w_post:
        w_post_ref = param_refs[pi]; pi += 1
    if has_bias:
        b_ref = param_refs[pi]; pi += 1
    if has_w_next:
        w_next_ref = param_refs[pi]; pi += 1

    k = pl.program_id(1)

    @pl.when(k == 0)
    def _():
        acc_ref[...] = jnp.zeros_like(acc_ref)

    acc_ref[...] += jnp.dot(a_ref[...], h_ref[...],
                            preferred_element_type=jnp.float32)

    @pl.when(k == pl.num_programs(1) - 1)
    def _():
        t = acc_ref[...]                                        # [tm, F_agg] f32
        if has_w_post:
            t = jnp.dot(t, w_post_ref[...], preferred_element_type=jnp.float32)
        if has_bias:
            t = t + b_ref[...]
        if apply_relu:
            t = jnp.maximum(t, 0.0)
        if has_w_next:
            t = jnp.dot(t, w_next_ref[...], preferred_element_type=jnp.float32)
        o_ref[...] = t.astype(o_ref.dtype)


def gcn_agg_layer(a_bf16, h, *, w_post=None, bias=None, w_next=None,
                  apply_relu=True, out_dtype=jnp.bfloat16,
                  block_m=512, block_k=512):
    n = a_bf16.shape[0]
    f_in = h.shape[1]
    tm = _tile(n, block_m, 8)      # sublane-aligned row tile
    tk = _tile(n, block_k, 128)    # lane-aligned K tile (last dim of A block)

    f_mid = w_post.shape[1] if w_post is not None else f_in
    f_out = w_next.shape[1] if w_next is not None else f_mid

    in_specs = [
        pl.BlockSpec((tm, tk), lambda i, k: (i, k)),
        pl.BlockSpec((tk, f_in), lambda i, k: (k, 0)),
    ]
    args = [a_bf16, h]
    if w_post is not None:
        in_specs.append(pl.BlockSpec((w_post.shape[0], f_mid), lambda i, k: (0, 0)))
        args.append(w_post)
    if bias is not None:
        in_specs.append(pl.BlockSpec((1, f_mid), lambda i, k: (0, 0)))
        args.append(bias.reshape(1, f_mid))
    if w_next is not None:
        in_specs.append(pl.BlockSpec((f_mid, f_out), lambda i, k: (0, 0)))
        args.append(w_next)

    kernel = functools.partial(
        _agg_kernel,
        has_w_post=w_post is not None,
        has_bias=bias is not None,
        has_w_next=w_next is not None,
        apply_relu=apply_relu)

    return pl.pallas_call(
        kernel,
        out_shape=jax.ShapeDtypeStruct((n, f_out), out_dtype),
        grid_spec=pltpu.PrefetchScalarGridSpec(
            num_scalar_prefetch=0,
            grid=(n // tm, n // tk),
            in_specs=in_specs,
            out_specs=pl.BlockSpec((tm, f_out), lambda i, k: (i, 0)),
            scratch_shapes=[pltpu.VMEM((tm, f_in), jnp.float32)]),
        compiler_params=pltpu.CompilerParams(
            dimension_semantics=("parallel", "arbitrary"),
            vmem_limit_bytes=48 * 1024 * 1024),
    )(*args)


# ---------------------------------------------------------------------------
# Kernel 2: global_max_pool (tiled running masked max) + Linear + log_softmax
# ---------------------------------------------------------------------------
def _pool_fc_kernel(x_ref, m_ref, wfc_ref, bfc_ref, o_ref, pooled_ref, *, num_graphs):
    k = pl.program_id(0)
    neg = jnp.float32(-1e30)

    @pl.when(k == 0)
    def _():
        pooled_ref[...] = jnp.full_like(pooled_ref, neg)

    x = x_ref[...].astype(jnp.float32)        # [tn, F]
    m = m_ref[...]                            # [G, tn]
    for g in range(num_graphs):               # static unroll; G is small
        mg = m[g, :][:, None]                 # [tn, 1]
        masked = jnp.where(mg > 0.5, x, neg)  # [tn, F]
        bmax = jnp.max(masked, axis=0, keepdims=True)      # [1, F]
        pooled_ref[g:g + 1, :] = jnp.maximum(pooled_ref[g:g + 1, :], bmax)

    @pl.when(k == pl.num_programs(0) - 1)
    def _():
        pooled = pooled_ref[...]                                       # [G, F]
        logits = jnp.dot(pooled, wfc_ref[...],
                         preferred_element_type=jnp.float32) + bfc_ref[...]
        mx = jnp.max(logits, axis=1, keepdims=True)
        z = logits - mx
        lse = jnp.log(jnp.sum(jnp.exp(z), axis=1, keepdims=True))
        o_ref[...] = (z - lse).astype(o_ref.dtype)


def pool_fc_logsoftmax(h, mask, wfc, bfc, block_n=512):
    n, f = h.shape
    g = mask.shape[0]
    c = wfc.shape[1]
    tn = _tile(n, block_n, 128)   # tn is the last dim of the mask block
    kernel = functools.partial(_pool_fc_kernel, num_graphs=g)
    return pl.pallas_call(
        kernel,
        out_shape=jax.ShapeDtypeStruct((g, c), jnp.float32),
        grid_spec=pltpu.PrefetchScalarGridSpec(
            num_scalar_prefetch=0,
            grid=(n // tn,),
            in_specs=[pl.BlockSpec((tn, f), lambda k: (k, 0)),
                      pl.BlockSpec((g, tn), lambda k: (0, k)),
                      pl.BlockSpec((f, c), lambda k: (0, 0)),
                      pl.BlockSpec((1, c), lambda k: (0, 0))],
            out_specs=pl.BlockSpec((g, c), lambda k: (0, 0)),
            scratch_shapes=[pltpu.VMEM((g, f), jnp.float32)]),
        compiler_params=pltpu.CompilerParams(
            dimension_semantics=("arbitrary",),
            vmem_limit_bytes=48 * 1024 * 1024),
    )(h, mask, wfc, bfc.reshape(1, c))


# ---------------------------------------------------------------------------
# Glue: normalized adjacency, params, full forward
# ---------------------------------------------------------------------------
def build_norm_adjacency(edge_index, num_nodes, edge_weight=None):
    """A_hat = D^{-1/2} (A + I) D^{-1/2}  (GCNConv normalization, self-loops)."""
    src, dst = edge_index[0], edge_index[1]
    if edge_weight is None:
        edge_weight = jnp.ones(src.shape[0], dtype=jnp.float32)
    a = jnp.zeros((num_nodes, num_nodes), dtype=jnp.float32)
    a = a.at[dst, src].add(edge_weight)             # row = target, col = source
    a = a + jnp.eye(num_nodes, dtype=jnp.float32)   # self-loops (weight 1)
    deg = jnp.sum(a, axis=1)
    dinv_sqrt = jnp.where(deg > 0, 1.0 / jnp.sqrt(deg), 0.0)
    return dinv_sqrt[:, None] * a * dinv_sqrt[None, :]


def init_params(key, num_features, num_classes):
    dims = [(num_features, 128), (128, 64), (64, 32)]
    params = {}
    keys = jax.random.split(key, 5)
    for i, (fi, fo) in enumerate(dims):
        scale = (6.0 / (fi + fo)) ** 0.5            # glorot (PyG GCNConv default)
        params[f"w{i+1}"] = jax.random.uniform(
            keys[i], (fi, fo), jnp.float32, -scale, scale)
        params[f"b{i+1}"] = jnp.zeros((fo,), jnp.float32)
    scale = 1.0 / (32.0 ** 0.5)
    params["wfc"] = jax.random.uniform(keys[3], (32, num_classes), jnp.float32,
                                       -scale, scale)
    params["bfc"] = jax.random.uniform(keys[4], (num_classes,), jnp.float32,
                                       -scale, scale)
    return params


@functools.partial(jax.jit, static_argnames=("block_m", "block_k"))
def gcn_forward(params, x, a_hat, mask, block_m=512, block_k=512):
    hp = HIDDEN_PAD
    c = params["wfc"].shape[1]
    # Zero-pad narrow hidden widths (64, 32) up to 128 lanes. Exact: padded
    # columns stay zero through bias/relu and contribute nothing downstream.
    w2p = _pad_to(params["w2"], (hp, hp))
    b2p = _pad_to(params["b2"], (hp,))
    w3p = _pad_to(params["w3"], (hp, hp))
    b3p = _pad_to(params["b3"], (hp,))
    wfcp = _pad_to(params["wfc"], (hp, c))

    a_bf = a_hat.astype(jnp.bfloat16)   # halves HBM traffic on the [N,N] reads
    x_bf = x.astype(jnp.bfloat16)

    # Layer 1, reordered as (A @ X) @ W1, fused with +b1, relu, and @W2.
    hw2 = gcn_agg_layer(a_bf, x_bf, w_post=params["w1"], bias=params["b1"],
                        w_next=w2p, out_dtype=jnp.bfloat16,
                        block_m=block_m, block_k=block_k)
    # Layer 2: relu(A @ (H1 @ W2) + b2), fused with @W3.
    hw3 = gcn_agg_layer(a_bf, hw2, bias=b2p, w_next=w3p, out_dtype=jnp.bfloat16,
                        block_m=block_m, block_k=block_k)
    # Layer 3: relu(A @ (H2 @ W3) + b3); f32 out feeds the f32 pool/softmax path.
    h3 = gcn_agg_layer(a_bf, hw3, bias=b3p, out_dtype=jnp.float32,
                       block_m=block_m, block_k=block_k)

    return pool_fc_logsoftmax(h3, mask, wfcp, params["bfc"], block_n=block_k)


def reference_forward(params, x, a_hat, mask):
    """Pure-JAX f32 reference (same math, unpadded)."""
    h = jax.nn.relu(a_hat @ (x @ params["w1"]) + params["b1"])
    h = jax.nn.relu(a_hat @ (h @ params["w2"]) + params["b2"])
    h = jax.nn.relu(a_hat @ (h @ params["w3"]) + params["b3"])
    masked = jnp.where(mask[:, :, None] > 0.5, h[None, :, :], -1e30)
    pooled = jnp.max(masked, axis=1)
    logits = pooled @ params["wfc"] + params["bfc"]
    return jax.nn.log_softmax(logits, axis=1)


if __name__ == "__main__":
    key = jax.random.PRNGKey(0)
    k_x, k_p = jax.random.split(key)

    # Small synthetic graph batch: 2 graphs of 128 nodes (N=256) so the tiled
    # grids (128-sized blocks) actually take multiple steps.
    num_graphs = 2
    nodes_per_graph = 128
    num_nodes = num_graphs * nodes_per_graph
    num_features = 8
    num_classes = 4

    x = jax.random.normal(k_x, (num_nodes, num_features), dtype=jnp.float32)

    # Ring edges within each graph (symmetric, directed both ways).
    src_list, dst_list = [], []
    for g in range(num_graphs):
        base = g * nodes_per_graph
        for i in range(nodes_per_graph):
            s, d = base + i, base + (i + 1) % nodes_per_graph
            src_list += [s, d]
            dst_list += [d, s]
    edge_index = jnp.array([src_list, dst_list], dtype=jnp.int32)

    batch = jnp.repeat(jnp.arange(num_graphs, dtype=jnp.int32), nodes_per_graph)
    mask = (batch[None, :] == jnp.arange(num_graphs)[:, None]).astype(jnp.float32)

    a_hat = build_norm_adjacency(edge_index, num_nodes)
    params = init_params(k_p, num_features, num_classes)

    out = gcn_forward(params, x, a_hat, mask, block_m=128, block_k=128)
    out = jax.block_until_ready(out)
    assert out.shape == (num_graphs, num_classes)
    # log_softmax rows exponentiate to probability distributions
    assert jnp.allclose(jnp.sum(jnp.exp(out), axis=1), 1.0, atol=1e-3)
    # matches the f32 reference within bf16 tolerance
    ref = reference_forward(params, x, a_hat, mask)
    assert jnp.allclose(out, ref, atol=0.15), (out, ref)
    print("KERNEL_OK")
</pallas_src>

<mosaic_0001>
module attributes {stable_mosaic.version = 11 : i64} {
  func.func @_agg_kernel(%arg0: i32, %arg1: i32, %arg2: memref<128x128xbf16, #tpu.memory_space<vmem>>, %arg3: memref<128x8xbf16, #tpu.memory_space<vmem>>, %arg4: memref<8x128xf32, #tpu.memory_space<vmem>>, %arg5: memref<1x128xf32, #tpu.memory_space<vmem>>, %arg6: memref<128x128xf32, #tpu.memory_space<vmem>>, %arg7: memref<128x128xbf16, #tpu.memory_space<vmem>>, %arg8: memref<128x8xf32, #tpu.memory_space<vmem>>) attributes {dimension_semantics = [#tpu.dimension_semantics<parallel>, #tpu.dimension_semantics<arbitrary>], iteration_bounds = array<i64: 2, 2>, scalar_prefetch = 0 : i64, scratch_operands = 1 : i64, tpu.core_type = #tpu.core_type<tc>, window_params = [{transform_indices = @transform_0, window_bounds = array<i64: 128, 128>}, {transform_indices = @transform_1, window_bounds = array<i64: 128, 8>}, {pipeline_mode = #tpu.pipeline_mode<synchronous>, transform_indices = @transform_2, window_bounds = array<i64: 8, 128>}, {pipeline_mode = #tpu.pipeline_mode<synchronous>, transform_indices = @transform_3, window_bounds = array<i64: 1, 128>}, {pipeline_mode = #tpu.pipeline_mode<synchronous>, transform_indices = @transform_4, window_bounds = array<i64: 128, 128>}, {transform_indices = @transform_5, window_bounds = array<i64: 128, 128>}]} {
    %c0_i32 = arith.constant 0 : i32
    %0 = arith.cmpi eq, %arg1, %c0_i32 : i32
    %1 = arith.extui %0 : i1 to i32
    %c0_i32_0 = arith.constant 0 : i32
    %2 = arith.cmpi ne, %1, %c0_i32_0 : i32
    scf.if %2 {
      %cst_9 = arith.constant 0.000000e+00 : f32
      %12 = vector.broadcast %cst_9 : f32 to vector<128x8xf32>
      %c0_10 = arith.constant 0 : index
      %c0_11 = arith.constant 0 : index
      %13 = vector.load %arg8[%c0_10, %c0_11] : memref<128x8xf32, #tpu.memory_space<vmem>>, vector<128x8xf32>
      tpu.vector_store %arg8[%c0_10, %c0_11], %12 {strides = array<i32>} : memref<128x8xf32, #tpu.memory_space<vmem>>, vector<128x8xf32>,
    } else {
    }
    %c0 = arith.constant 0 : index
    %c0_1 = arith.constant 0 : index
    %3 = vector.load %arg8[%c0, %c0_1] : memref<128x8xf32, #tpu.memory_space<vmem>>, vector<128x8xf32>
    %c0_2 = arith.constant 0 : index
    %c0_3 = arith.constant 0 : index
    %4 = vector.load %arg2[%c0_2, %c0_3] : memref<128x128xbf16, #tpu.memory_space<vmem>>, vector<128x128xbf16>
    %c0_4 = arith.constant 0 : index
    %c0_5 = arith.constant 0 : index
    %5 = vector.load %arg3[%c0_4, %c0_5] : memref<128x8xbf16, #tpu.memory_space<vmem>>, vector<128x8xbf16>
    %cst = arith.constant dense<0.000000e+00> : vector<128x8xf32>
    %6 = tpu.matmul %4, %5, %cst {dimension_numbers = #tpu.dot_dimension_numbers<[1], [0], [0], [1], [0, 0, 1, 1], [], []>} : vector<128x128xbf16>, vector<128x8xbf16>, vector<128x8xf32> -> vector<128x8xf32>
    %7 = arith.addf %3, %6 : vector<128x8xf32>
    %c0_6 = arith.constant 0 : index
    %c0_7 = arith.constant 0 : index
    %8 = vector.load %arg8[%c0_6, %c0_7] : memref<128x8xf32, #tpu.memory_space<vmem>>, vector<128x8xf32>
    tpu.vector_store %arg8[%c0_6, %c0_7], %7 {strides = array<i32>} : memref<128x8xf32, #tpu.memory_space<vmem>>, vector<128x8xf32>,
    %c1_i32 = arith.constant 1 : i32
    %9 = arith.cmpi eq, %arg1, %c1_i32 : i32
    %10 = arith.extui %9 : i1 to i32
    %c0_i32_8 = arith.constant 0 : i32
    %11 = arith.cmpi ne, %10, %c0_i32_8 : i32
    scf.if %11 {
      %c0_9 = arith.constant 0 : index
      %c0_10 = arith.constant 0 : index
      %12 = vector.load %arg8[%c0_9, %c0_10] : memref<128x8xf32, #tpu.memory_space<vmem>>, vector<128x8xf32>
      %c0_11 = arith.constant 0 : index
      %c0_12 = arith.constant 0 : index
      %13 = vector.load %arg4[%c0_11, %c0_12] : memref<8x128xf32, #tpu.memory_space<vmem>>, vector<8x128xf32>
      %cst_13 = arith.constant dense<0.000000e+00> : vector<128x128xf32>
      %14 = tpu.matmul %12, %13, %cst_13 {dimension_numbers = #tpu.dot_dimension_numbers<[1], [0], [0], [1], [0, 0, 1, 1], [], []>} : vector<128x8xf32>, vector<8x128xf32>, vector<128x128xf32> -> vector<128x128xf32>
      %c0_14 = arith.constant 0 : index
      %c0_15 = arith.constant 0 : index
      %15 = vector.load %arg5[%c0_14, %c0_15] : memref<1x128xf32, #tpu.memory_space<vmem>>, vector<1x128xf32>
      %16 = vector.broadcast %15 : vector<1x128xf32> to vector<128x128xf32>
      %17 = arith.addf %14, %16 : vector<128x128xf32>
      %cst_16 = arith.constant 0.000000e+00 : f32
      %18 = vector.broadcast %cst_16 : f32 to vector<128x128xf32>
      %19 = arith.maximumf %17, %18 : vector<128x128xf32>
      %c0_17 = arith.constant 0 : index
      %c0_18 = arith.constant 0 : index
      %20 = vector.load %arg6[%c0_17, %c0_18] : memref<128x128xf32, #tpu.memory_space<vmem>>, vector<128x128xf32>
      %cst_19 = arith.constant dense<0.000000e+00> : vector<128x128xf32>
      %21 = tpu.matmul %19, %20, %cst_19 {dimension_numbers = #tpu.dot_dimension_numbers<[1], [0], [0], [1], [0, 0, 1, 1], [], []>} : vector<128x128xf32>, vector<128x128xf32>, vector<128x128xf32> -> vector<128x128xf32>
      %22 = arith.truncf %21 : vector<128x128xf32> to vector<128x128xbf16>
      %c0_20 = arith.constant 0 : index
      %c0_21 = arith.constant 0 : index
      %23 = vector.load %arg7[%c0_20, %c0_21] : memref<128x128xbf16, #tpu.memory_space<vmem>>, vector<128x128xbf16>
      tpu.vector_store %arg7[%c0_20, %c0_21], %22 {strides = array<i32>} : memref<128x128xbf16, #tpu.memory_space<vmem>>, vector<128x128xbf16>,
    } else {
    }
    return
  }
  func.func @transform_0(%arg0: i32, %arg1: i32) -> (i32, i32) {
    %c0_i32 = arith.constant 0 : i32
    return %arg0, %arg1 : i32, i32
  }
  func.func @transform_1(%arg0: i32, %arg1: i32) -> (i32, i32) {
    %c0_i32 = arith.constant 0 : i32
    %c0_i32_0 = arith.constant 0 : i32
    return %arg1, %c0_i32 : i32, i32
  }
  func.func @transform_2(%arg0: i32, %arg1: i32) -> (i32, i32) {
    %c0_i32 = arith.constant 0 : i32
    %c0_i32_0 = arith.constant 0 : i32
    %c0_i32_1 = arith.constant 0 : i32
    return %c0_i32, %c0_i32_0 : i32, i32
  }
  func.func @transform_3(%arg0: i32, %arg1: i32) -> (i32, i32) {
    %c0_i32 = arith.constant 0 : i32
    %c0_i32_0 = arith.constant 0 : i32
    %c0_i32_1 = arith.constant 0 : i32
    return %c0_i32, %c0_i32_0 : i32, i32
  }
  func.func @transform_4(%arg0: i32, %arg1: i32) -> (i32, i32) {
    %c0_i32 = arith.constant 0 : i32
    %c0_i32_0 = arith.constant 0 : i32
    %c0_i32_1 = arith.constant 0 : i32
    return %c0_i32, %c0_i32_0 : i32, i32
  }
  func.func @transform_5(%arg0: i32, %arg1: i32) -> (i32, i32) {
    %c0_i32 = arith.constant 0 : i32
    %c0_i32_0 = arith.constant 0 : i32
    return %arg0, %c0_i32 : i32, i32
  }
}

module attributes {stable_mosaic.version = 11 : i64} {
  func.func @_agg_kernel(%arg0: i32, %arg1: i32, %arg2: memref<128x128xbf16, #tpu.memory_space<vmem>>, %arg3: memref<128x128xbf16, #tpu.memory_space<vmem>>, %arg4: memref<1x128xf32, #tpu.memory_space<vmem>>, %arg5: memref<128x128xf32, #tpu.memory_space<vmem>>, %arg6: memref<128x128xf32, #tpu.memory_space<vmem>>) attributes {dimension_semantics = [#tpu.dimension_semantics<parallel>, #tpu.dimension_semantics<arbitrary>], iteration_bounds = array<i64: 2, 2>, scalar_prefetch = 0 : i64, scratch_operands = 1 : i64, tpu.core_type = #tpu.core_type<tc>, window_params = [{transform_indices = @transform_0, window_bounds = array<i64: 128, 128>}, {transform_indices = @transform_1, window_bounds = array<i64: 128, 128>}, {pipeline_mode = #tpu.pipeline_mode<synchronous>, transform_indices = @transform_2, window_bounds = array<i64: 1, 128>}, {transform_indices = @transform_3, window_bounds = array<i64: 128, 128>}]} {
    %c0_i32 = arith.constant 0 : i32
    %0 = arith.cmpi eq, %arg1, %c0_i32 : i32
    %1 = arith.extui %0 : i1 to i32
    %c0_i32_0 = arith.constant 0 : i32
    %2 = arith.cmpi ne, %1, %c0_i32_0 : i32
    scf.if %2 {
      %cst_9 = arith.constant 0.000000e+00 : f32
      %12 = vector.broadcast %cst_9 : f32 to vector<128x128xf32>
      %c0_10 = arith.constant 0 : index
      %c0_11 = arith.constant 0 : index
      %13 = vector.load %arg6[%c0_10, %c0_11] : memref<128x128xf32, #tpu.memory_space<vmem>>, vector<128x128xf32>
      tpu.vector_store %arg6[%c0_10, %c0_11], %12 {strides = array<i32>} : memref<128x128xf32, #tpu.memory_space<vmem>>, vector<128x128xf32>,
    } else {
    }
    %c0 = arith.constant 0 : index
    %c0_1 = arith.constant 0 : index
    %3 = vector.load %arg6[%c0, %c0_1] : memref<128x128xf32, #tpu.memory_space<vmem>>, vector<128x128xf32>
    %c0_2 = arith.constant 0 : index
    %c0_3 = arith.constant 0 : index
    %4 = vector.load %arg2[%c0_2, %c0_3] : memref<128x128xbf16, #tpu.memory_space<vmem>>, vector<128x128xbf16>
    %c0_4 = arith.constant 0 : index
    %c0_5 = arith.constant 0 : index
    %5 = vector.load %arg3[%c0_4, %c0_5] : memref<128x128xbf16, #tpu.memory_space<vmem>>, vector<128x128xbf16>
    %cst = arith.constant dense<0.000000e+00> : vector<128x128xf32>
    %6 = tpu.matmul %4, %5, %cst {dimension_numbers = #tpu.dot_dimension_numbers<[1], [0], [0], [1], [0, 0, 1, 1], [], []>} : vector<128x128xbf16>, vector<128x128xbf16>, vector<128x128xf32> -> vector<128x128xf32>
    %7 = arith.addf %3, %6 : vector<128x128xf32>
    %c0_6 = arith.constant 0 : index
    %c0_7 = arith.constant 0 : index
    %8 = vector.load %arg6[%c0_6, %c0_7] : memref<128x128xf32, #tpu.memory_space<vmem>>, vector<128x128xf32>
    tpu.vector_store %arg6[%c0_6, %c0_7], %7 {strides = array<i32>} : memref<128x128xf32, #tpu.memory_space<vmem>>, vector<128x128xf32>,
    %c1_i32 = arith.constant 1 : i32
    %9 = arith.cmpi eq, %arg1, %c1_i32 : i32
    %10 = arith.extui %9 : i1 to i32
    %c0_i32_8 = arith.constant 0 : i32
    %11 = arith.cmpi ne, %10, %c0_i32_8 : i32
    scf.if %11 {
      %c0_9 = arith.constant 0 : index
      %c0_10 = arith.constant 0 : index
      %12 = vector.load %arg6[%c0_9, %c0_10] : memref<128x128xf32, #tpu.memory_space<vmem>>, vector<128x128xf32>
      %c0_11 = arith.constant 0 : index
      %c0_12 = arith.constant 0 : index
      %13 = vector.load %arg4[%c0_11, %c0_12] : memref<1x128xf32, #tpu.memory_space<vmem>>, vector<1x128xf32>
      %14 = vector.broadcast %13 : vector<1x128xf32> to vector<128x128xf32>
      %15 = arith.addf %12, %14 : vector<128x128xf32>
      %cst_13 = arith.constant 0.000000e+00 : f32
      %16 = vector.broadcast %cst_13 : f32 to vector<128x128xf32>
      %17 = arith.maximumf %15, %16 : vector<128x128xf32>
      %c0_14 = arith.constant 0 : index
      %c0_15 = arith.constant 0 : index
      %18 = vector.load %arg5[%c0_14, %c0_15] : memref<128x128xf32, #tpu.memory_space<vmem>>, vector<128x128xf32>
      tpu.vector_store %arg5[%c0_14, %c0_15], %17 {strides = array<i32>} : memref<128x128xf32, #tpu.memory_space<vmem>>, vector<128x128xf32>,
    } else {
    }
    return
  }
  func.func @transform_0(%arg0: i32, %arg1: i32) -> (i32, i32) {
    %c0_i32 = arith.constant 0 : i32
    return %arg0, %arg1 : i32, i32
  }
  func.func @transform_1(%arg0: i32, %arg1: i32) -> (i32, i32) {
    %c0_i32 = arith.constant 0 : i32
    %c0_i32_0 = arith.constant 0 : i32
    return %arg1, %c0_i32 : i32, i32
  }
  func.func @transform_2(%arg0: i32, %arg1: i32) -> (i32, i32) {
    %c0_i32 = arith.constant 0 : i32
    %c0_i32_0 = arith.constant 0 : i32
    %c0_i32_1 = arith.constant 0 : i32
    return %c0_i32, %c0_i32_0 : i32, i32
  }
  func.func @transform_3(%arg0: i32, %arg1: i32) -> (i32, i32) {
    %c0_i32 = arith.constant 0 : i32
    %c0_i32_0 = arith.constant 0 : i32
    return %arg0, %c0_i32 : i32, i32
  }
}

module attributes {stable_mosaic.version = 11 : i64} {
  func.func @_agg_kernel(%arg0: i32, %arg1: i32, %arg2: memref<128x128xbf16, #tpu.memory_space<vmem>>, %arg3: memref<128x128xbf16, #tpu.memory_space<vmem>>, %arg4: memref<1x128xf32, #tpu.memory_space<vmem>>, %arg5: memref<128x128xf32, #tpu.memory_space<vmem>>, %arg6: memref<128x128xbf16, #tpu.memory_space<vmem>>, %arg7: memref<128x128xf32, #tpu.memory_space<vmem>>) attributes {dimension_semantics = [#tpu.dimension_semantics<parallel>, #tpu.dimension_semantics<arbitrary>], iteration_bounds = array<i64: 2, 2>, scalar_prefetch = 0 : i64, scratch_operands = 1 : i64, tpu.core_type = #tpu.core_type<tc>, window_params = [{transform_indices = @transform_0, window_bounds = array<i64: 128, 128>}, {transform_indices = @transform_1, window_bounds = array<i64: 128, 128>}, {pipeline_mode = #tpu.pipeline_mode<synchronous>, transform_indices = @transform_2, window_bounds = array<i64: 1, 128>}, {pipeline_mode = #tpu.pipeline_mode<synchronous>, transform_indices = @transform_3, window_bounds = array<i64: 128, 128>}, {transform_indices = @transform_4, window_bounds = array<i64: 128, 128>}]} {
    %c0_i32 = arith.constant 0 : i32
    %0 = arith.cmpi eq, %arg1, %c0_i32 : i32
    %1 = arith.extui %0 : i1 to i32
    %c0_i32_0 = arith.constant 0 : i32
    %2 = arith.cmpi ne, %1, %c0_i32_0 : i32
    scf.if %2 {
      %cst_9 = arith.constant 0.000000e+00 : f32
      %12 = vector.broadcast %cst_9 : f32 to vector<128x128xf32>
      %c0_10 = arith.constant 0 : index
      %c0_11 = arith.constant 0 : index
      %13 = vector.load %arg7[%c0_10, %c0_11] : memref<128x128xf32, #tpu.memory_space<vmem>>, vector<128x128xf32>
      tpu.vector_store %arg7[%c0_10, %c0_11], %12 {strides = array<i32>} : memref<128x128xf32, #tpu.memory_space<vmem>>, vector<128x128xf32>,
    } else {
    }
    %c0 = arith.constant 0 : index
    %c0_1 = arith.constant 0 : index
    %3 = vector.load %arg7[%c0, %c0_1] : memref<128x128xf32, #tpu.memory_space<vmem>>, vector<128x128xf32>
    %c0_2 = arith.constant 0 : index
    %c0_3 = arith.constant 0 : index
    %4 = vector.load %arg2[%c0_2, %c0_3] : memref<128x128xbf16, #tpu.memory_space<vmem>>, vector<128x128xbf16>
    %c0_4 = arith.constant 0 : index
    %c0_5 = arith.constant 0 : index
    %5 = vector.load %arg3[%c0_4, %c0_5] : memref<128x128xbf16, #tpu.memory_space<vmem>>, vector<128x128xbf16>
    %cst = arith.constant dense<0.000000e+00> : vector<128x128xf32>
    %6 = tpu.matmul %4, %5, %cst {dimension_numbers = #tpu.dot_dimension_numbers<[1], [0], [0], [1], [0, 0, 1, 1], [], []>} : vector<128x128xbf16>, vector<128x128xbf16>, vector<128x128xf32> -> vector<128x128xf32>
    %7 = arith.addf %3, %6 : vector<128x128xf32>
    %c0_6 = arith.constant 0 : index
    %c0_7 = arith.constant 0 : index
    %8 = vector.load %arg7[%c0_6, %c0_7] : memref<128x128xf32, #tpu.memory_space<vmem>>, vector<128x128xf32>
    tpu.vector_store %arg7[%c0_6, %c0_7], %7 {strides = array<i32>} : memref<128x128xf32, #tpu.memory_space<vmem>>, vector<128x128xf32>,
    %c1_i32 = arith.constant 1 : i32
    %9 = arith.cmpi eq, %arg1, %c1_i32 : i32
    %10 = arith.extui %9 : i1 to i32
    %c0_i32_8 = arith.constant 0 : i32
    %11 = arith.cmpi ne, %10, %c0_i32_8 : i32
    scf.if %11 {
      %c0_9 = arith.constant 0 : index
      %c0_10 = arith.constant 0 : index
      %12 = vector.load %arg7[%c0_9, %c0_10] : memref<128x128xf32, #tpu.memory_space<vmem>>, vector<128x128xf32>
      %c0_11 = arith.constant 0 : index
      %c0_12 = arith.constant 0 : index
      %13 = vector.load %arg4[%c0_11, %c0_12] : memref<1x128xf32, #tpu.memory_space<vmem>>, vector<1x128xf32>
      %14 = vector.broadcast %13 : vector<1x128xf32> to vector<128x128xf32>
      %15 = arith.addf %12, %14 : vector<128x128xf32>
      %cst_13 = arith.constant 0.000000e+00 : f32
      %16 = vector.broadcast %cst_13 : f32 to vector<128x128xf32>
      %17 = arith.maximumf %15, %16 : vector<128x128xf32>
      %c0_14 = arith.constant 0 : index
      %c0_15 = arith.constant 0 : index
      %18 = vector.load %arg5[%c0_14, %c0_15] : memref<128x128xf32, #tpu.memory_space<vmem>>, vector<128x128xf32>
      %cst_16 = arith.constant dense<0.000000e+00> : vector<128x128xf32>
      %19 = tpu.matmul %17, %18, %cst_16 {dimension_numbers = #tpu.dot_dimension_numbers<[1], [0], [0], [1], [0, 0, 1, 1], [], []>} : vector<128x128xf32>, vector<128x128xf32>, vector<128x128xf32> -> vector<128x128xf32>
      %20 = arith.truncf %19 : vector<128x128xf32> to vector<128x128xbf16>
      %c0_17 = arith.constant 0 : index
      %c0_18 = arith.constant 0 : index
      %21 = vector.load %arg6[%c0_17, %c0_18] : memref<128x128xbf16, #tpu.memory_space<vmem>>, vector<128x128xbf16>
      tpu.vector_store %arg6[%c0_17, %c0_18], %20 {strides = array<i32>} : memref<128x128xbf16, #tpu.memory_space<vmem>>, vector<128x128xbf16>,
    } else {
    }
    return
  }
  func.func @transform_0(%arg0: i32, %arg1: i32) -> (i32, i32) {
    %c0_i32 = arith.constant 0 : i32
    return %arg0, %arg1 : i32, i32
  }
  func.func @transform_1(%arg0: i32, %arg1: i32) -> (i32, i32) {
    %c0_i32 = arith.constant 0 : i32
    %c0_i32_0 = arith.constant 0 : i32
    return %arg1, %c0_i32 : i32, i32
  }
  func.func @transform_2(%arg0: i32, %arg1: i32) -> (i32, i32) {
    %c0_i32 = arith.constant 0 : i32
    %c0_i32_0 = arith.constant 0 : i32
    %c0_i32_1 = arith.constant 0 : i32
    return %c0_i32, %c0_i32_0 : i32, i32
  }
  func.func @transform_3(%arg0: i32, %arg1: i32) -> (i32, i32) {
    %c0_i32 = arith.constant 0 : i32
    %c0_i32_0 = arith.constant 0 : i32
    %c0_i32_1 = arith.constant 0 : i32
    return %c0_i32, %c0_i32_0 : i32, i32
  }
  func.func @transform_4(%arg0: i32, %arg1: i32) -> (i32, i32) {
    %c0_i32 = arith.constant 0 : i32
    %c0_i32_0 = arith.constant 0 : i32
    return %arg0, %c0_i32 : i32, i32
  }
}

module attributes {stable_mosaic.version = 11 : i64} {
  func.func @_pool_fc_kernel(%arg0: i32, %arg1: memref<128x128xf32, #tpu.memory_space<vmem>>, %arg2: memref<2x128xf32, #tpu.memory_space<vmem>>, %arg3: memref<128x4xf32, #tpu.memory_space<vmem>>, %arg4: memref<1x4xf32, #tpu.memory_space<vmem>>, %arg5: memref<2x4xf32, #tpu.memory_space<vmem>>, %arg6: memref<2x128xf32, #tpu.memory_space<vmem>>) attributes {dimension_semantics = [#tpu.dimension_semantics<arbitrary>], iteration_bounds = array<i64: 2>, scalar_prefetch = 0 : i64, scratch_operands = 1 : i64, tpu.core_type = #tpu.core_type<tc>, window_params = [{transform_indices = @transform_0, window_bounds = array<i64: 128, 128>}, {transform_indices = @transform_1, window_bounds = array<i64: 2, 128>}, {pipeline_mode = #tpu.pipeline_mode<synchronous>, transform_indices = @transform_2, window_bounds = array<i64: 128, 4>}, {pipeline_mode = #tpu.pipeline_mode<synchronous>, transform_indices = @transform_3, window_bounds = array<i64: 1, 4>}, {pipeline_mode = #tpu.pipeline_mode<synchronous>, transform_indices = @transform_4, window_bounds = array<i64: 2, 4>}]} {
    %c0_i32 = arith.constant 0 : i32
    %0 = arith.cmpi eq, %arg0, %c0_i32 : i32
    %1 = arith.extui %0 : i1 to i32
    %cst = arith.constant -1.000000e+30 : f32
    %c0_i32_0 = arith.constant 0 : i32
    %2 = arith.cmpi ne, %1, %c0_i32_0 : i32
    scf.if %2 {
      %36 = vector.broadcast %cst : f32 to vector<2x128xf32>
      %c0_18 = arith.constant 0 : index
      %c0_19 = arith.constant 0 : index
      %37 = vector.load %arg6[%c0_18, %c0_19] : memref<2x128xf32, #tpu.memory_space<vmem>>, vector<2x128xf32>
      tpu.vector_store %arg6[%c0_18, %c0_19], %36 {strides = array<i32>} : memref<2x128xf32, #tpu.memory_space<vmem>>, vector<2x128xf32>,
    } else {
    }
    %c0 = arith.constant 0 : index
    %c0_1 = arith.constant 0 : index
    %3 = vector.load %arg1[%c0, %c0_1] : memref<128x128xf32, #tpu.memory_space<vmem>>, vector<128x128xf32>
    %c0_2 = arith.constant 0 : index
    %c0_3 = arith.constant 0 : index
    %4 = vector.load %arg2[%c0_2, %c0_3] : memref<2x128xf32, #tpu.memory_space<vmem>>, vector<2x128xf32>
    %5 = vector.extract_strided_slice %4 {offsets = [0, 0], sizes = [1, 128], strides = [1, 1]} : vector<2x128xf32> to vector<1x128xf32>
    %6 = vector.shape_cast %5 : vector<1x128xf32> to vector<128xf32>
    %7 = vector.shape_cast %6 : vector<128xf32> to vector<128x1xf32>
    %cst_4 = arith.constant 5.000000e-01 : f32
    %8 = vector.broadcast %cst_4 : f32 to vector<128x1xf32>
    %9 = arith.cmpf ogt, %7, %8 : vector<128x1xf32>
    %cst_5 = arith.constant -1.000000e+30 : f32
    %10 = vector.shape_cast %9 : vector<128x1xi1> to vector<128x1xi1>
    %11 = vector.broadcast %10 : vector<128x1xi1> to vector<128x128xi1>
    %12 = vector.broadcast %cst_5 : f32 to vector<128x128xf32>
    %13 = arith.select %11, %3, %12 : vector<128x128xi1>, vector<128x128xf32>
    %cst_6 = arith.constant dense<0xFF800000> : vector<128xf32>
    %14 = vector.multi_reduction <maximumf>, %13, %cst_6 [0] : vector<128x128xf32> to vector<128xf32>
    %15 = vector.shape_cast %14 : vector<128xf32> to vector<1x128xf32>
    %c0_7 = arith.constant 0 : index
    %c0_8 = arith.constant 0 : index
    %16 = vector.load %arg6[%c0_7, %c0_8] : memref<2x128xf32, #tpu.memory_space<vmem>>, vector<1x128xf32>
    %17 = arith.maximumf %16, %15 : vector<1x128xf32>
    %c0_9 = arith.constant 0 : index
    %c0_10 = arith.constant 0 : index
    %18 = vector.load %arg6[%c0_9, %c0_10] : memref<2x128xf32, #tpu.memory_space<vmem>>, vector<1x128xf32>
    tpu.vector_store %arg6[%c0_9, %c0_10], %17 {strides = array<i32>} : memref<2x128xf32, #tpu.memory_space<vmem>>, vector<1x128xf32>,
    %19 = vector.extract_strided_slice %4 {offsets = [1, 0], sizes = [1, 128], strides = [1, 1]} : vector<2x128xf32> to vector<1x128xf32>
    %20 = vector.shape_cast %19 : vector<1x128xf32> to vector<128xf32>
    %21 = vector.shape_cast %20 : vector<128xf32> to vector<128x1xf32>
    %cst_11 = arith.constant 5.000000e-01 : f32
    %22 = vector.broadcast %cst_11 : f32 to vector<128x1xf32>
    %23 = arith.cmpf ogt, %21, %22 : vector<128x1xf32>
    %cst_12 = arith.constant -1.000000e+30 : f32
    %24 = vector.shape_cast %23 : vector<128x1xi1> to vector<128x1xi1>
    %25 = vector.broadcast %24 : vector<128x1xi1> to vector<128x128xi1>
    %26 = vector.broadcast %cst_12 : f32 to vector<128x128xf32>
    %27 = arith.select %25, %3, %26 : vector<128x128xi1>, vector<128x128xf32>
    %cst_13 = arith.constant dense<0xFF800000> : vector<128xf32>
    %28 = vector.multi_reduction <maximumf>, %27, %cst_13 [0] : vector<128x128xf32> to vector<128xf32>
    %29 = vector.shape_cast %28 : vector<128xf32> to vector<1x128xf32>
    %c1 = arith.constant 1 : index
    %c0_14 = arith.constant 0 : index
    %30 = vector.load %arg6[%c1, %c0_14] : memref<2x128xf32, #tpu.memory_space<vmem>>, vector<1x128xf32>
    %31 = arith.maximumf %30, %29 : vector<1x128xf32>
    %c1_15 = arith.constant 1 : index
    %c0_16 = arith.constant 0 : index
    %32 = vector.load %arg6[%c1_15, %c0_16] : memref<2x128xf32, #tpu.memory_space<vmem>>, vector<1x128xf32>
    tpu.vector_store %arg6[%c1_15, %c0_16], %31 {strides = array<i32>} : memref<2x128xf32, #tpu.memory_space<vmem>>, vector<1x128xf32>,
    %c1_i32 = arith.constant 1 : i32
    %33 = arith.cmpi eq, %arg0, %c1_i32 : i32
    %34 = arith.extui %33 : i1 to i32
    %c0_i32_17 = arith.constant 0 : i32
    %35 = arith.cmpi ne, %34, %c0_i32_17 : i32
    scf.if %35 {
      %c0_18 = arith.constant 0 : index
      %c0_19 = arith.constant 0 : index
      %36 = vector.load %arg6[%c0_18, %c0_19] : memref<2x128xf32, #tpu.memory_space<vmem>>, vector<2x128xf32>
      %c0_20 = arith.constant 0 : index
      %c0_21 = arith.constant 0 : index
      %37 = vector.load %arg3[%c0_20, %c0_21] : memref<128x4xf32, #tpu.memory_space<vmem>>, vector<128x4xf32>
      %cst_22 = arith.constant dense<0.000000e+00> : vector<2x4xf32>
      %38 = tpu.matmul %36, %37, %cst_22 {dimension_numbers = #tpu.dot_dimension_numbers<[1], [0], [0], [1], [0, 0, 1, 1], [], []>} : vector<2x128xf32>, vector<128x4xf32>, vector<2x4xf32> -> vector<2x4xf32>
      %c0_23 = arith.constant 0 : index
      %c0_24 = arith.constant 0 : index
      %39 = vector.load %arg4[%c0_23, %c0_24] : memref<1x4xf32, #tpu.memory_space<vmem>>, vector<1x4xf32>
      %40 = vector.broadcast %39 : vector<1x4xf32> to vector<2x4xf32>
      %41 = arith.addf %38, %40 : vector<2x4xf32>
      %cst_25 = arith.constant dense<0xFF800000> : vector<2xf32>
      %42 = vector.multi_reduction <maximumf>, %41, %cst_25 [1] : vector<2x4xf32> to vector<2xf32>
      %43 = vector.shape_cast %42 : vector<2xf32> to vector<2x1xf32>
      %44 = vector.broadcast %43 : vector<2x1xf32> to vector<2x4xf32>
      %45 = arith.subf %41, %44 : vector<2x4xf32>
      %46 = math.exp %45 : vector<2x4xf32>
      %cst_26 = arith.constant dense<0.000000e+00> : vector<2xf32>
      %47 = vector.multi_reduction <add>, %46, %cst_26 [1] : vector<2x4xf32> to vector<2xf32>
      %48 = vector.shape_cast %47 : vector<2xf32> to vector<2x1xf32>
      %49 = math.log %48 : vector<2x1xf32>
      %50 = vector.broadcast %49 : vector<2x1xf32> to vector<2x4xf32>
      %51 = arith.subf %45, %50 : vector<2x4xf32>
      %c0_27 = arith.constant 0 : index
      %c0_28 = arith.constant 0 : index
      %52 = vector.load %arg5[%c0_27, %c0_28] : memref<2x4xf32, #tpu.memory_space<vmem>>, vector<2x4xf32>
      tpu.vector_store %arg5[%c0_27, %c0_28], %51 {strides = array<i32>} : memref<2x4xf32, #tpu.memory_space<vmem>>, vector<2x4xf32>,
    } else {
    }
    return
  }
  func.func @transform_0(%arg0: i32) -> (i32, i32) {
    %c0_i32 = arith.constant 0 : i32
    %c0_i32_0 = arith.constant 0 : i32
    return %arg0, %c0_i32 : i32, i32
  }
  func.func @transform_1(%arg0: i32) -> (i32, i32) {
    %c0_i32 = arith.constant 0 : i32
    %c0_i32_0 = arith.constant 0 : i32
    return %c0_i32, %arg0 : i32, i32
  }
  func.func @transform_2(%arg0: i32) -> (i32, i32) {
    %c0_i32 = arith.constant 0 : i32
    %c0_i32_0 = arith.constant 0 : i32
    %c0_i32_1 = arith.constant 0 : i32
    return %c0_i32, %c0_i32_0 : i32, i32
  }
  func.func @transform_3(%arg0: i32) -> (i32, i32) {
    %c0_i32 = arith.constant 0 : i32
    %c0_i32_0 = arith.constant 0 : i32
    %c0_i32_1 = arith.constant 0 : i32
    return %c0_i32, %c0_i32_0 : i32, i32
  }
  func.func @transform_4(%arg0: i32) -> (i32, i32) {
    %c0_i32 = arith.constant 0 : i32
    %c0_i32_0 = arith.constant 0 : i32
    %c0_i32_1 = arith.constant 0 : i32
    return %c0_i32, %c0_i32_0 : i32, i32
  }
}

</mosaic_0001>

<bundles_post_ra>
// kernel: gcn_forward.6
= control target key start
LH: loop header
LB: loop body
LE: loop exit
PB: predicated region body
PF: predicated region fallthrough
CT: control target
= control target key end

     0   :  { %s1020_s12 = smov 0   ;;  %s1022_s13 = smov 0   ;;  %s1173_s0 = inlined_call_operand.vmem [shape: bf16[256,256], index: 0, kind: input, shape index: {}]   ;;  %s1174_s1 = inlined_call_operand.vmem [shape: bf16[256,128], index: 1, kind: input, shape index: {}]   ;;  %s1175_s2 = inlined_call_operand.vmem [shape: f32[1,128], index: 2, kind: input, shape index: {}]   ;;  %s1176_s3 = inlined_call_operand.vmem [shape: f32[256,128], index: 3, kind: output, shape index: {}]  }
   0x1   :  { %s1024_s14 = smov 0   ;;  %s1026_s15 = smov 0  }
   0x2   :  { %s1028_s16 = smov 0   ;;  %s1030_s17 = smov 0  }
   0x3   :  { %s1032_s18 = smov 0  }
   0x4 LB: > { %s22_s19 = sadd.s32 1, %s989_s16  ;;  %s25_s20 = sadd.s32 1, %s993_s17  ;;  %s997_s18 = sphi %s1032_s18, %s13_s18   ;;  %s993_s17 = sphi %s1030_s17, %s1182_s17   ;;  %s989_s16 = sphi %s1028_s16, %s1181_s16   ;;  %s985_s15 = sphi %s1026_s15, %s1180_s15   ;;  %s981_s14 = sphi %s1024_s14, %s1179_s14   ;;  %s977_s13 = sphi %s1022_s13, %s1178_s13   ;;  %s973_s12 = sphi %s1020_s12, %s1177_s12  }
   0x5   : > { %p23_p0 = scmp.ge.s32.totalorder %s22_s19, 2  ;;  %p41_p1 = scmp.ne.s32.totalorder %s977_s13, %s973_s12 }
   0x6   : > { %p42_p2 = scmp.eq.s32.totalorder %s997_s18, 0  ;;  %s34_s24 = sadd.s32 1, %s977_s13 }
   0x7   : > { %s1184_s19 = smov (%p23_p0, %s22_s19), 0  ;;  %s1186_s20 = smov (!%p23_p0, %s25_s20), %s993_s17 }
   0x8   : > { %p43_p3 = por %p42_p2, %p41_p1  ;;  %p27_p4 = scmp.ge.s32.totalorder %s1186_s20, 2 }
   0x9   : > { %s30_s21 = ssub.s32 %s989_s16, %s1184_s19  ;;  %p773_p6 = scmp.ge.s32.totalorder %s997_s18, 4 }
   0xa   : > { %s1188_s20 = smov (%p27_p4, %s1186_s20), 0 }
   0xb   : > { %s29_s22 = ssub.s32 %s993_s17, %s1188_s20  ;;  %143 = sbr.rel (%p773_p6) target bundleno = 34 (0x22), region = 20 }
   0xc   : > { %s31_s23 = sor.u32 %s30_s21, %s29_s22 }
   0xd   : > { %p32_p5 = scmp.eq.s32.totalorder %s31_s23, 0 }
   0xf   : > { %s1071_s25 = scalar_select %p32_p5, %s977_s13, %s34_s24  }
  0x12   : > { %146 = sbr.rel (!%p43_p3) target bundleno = 34 (0x22), region = 24  ;;  %s148_s26 = sand.u32 (%p43_p3), 1, %s977_s13  }
  0x13   : > { %s805_s27 = sshll.u32 (%p43_p3), %s993_s17, 5  ;;  %s774_s28 = sshll.u32 (%p43_p3), %s148_s26, 6 }
  0x14   : > { %s153_s29 = sadd.s32 (%p43_p3), %s989_s16, %s805_s27  ;;  %s150_s7 = scalar_lea.vmem (%p43_p3), [#allocation3], %s774_s28 }
  0x15   : > { %s777_s30 = sshll.u32 (%p43_p3), %s153_s29, 2 }
  0x16   : > { %s1080_s6 = scalar_lea.vmem (%p43_p3), %s1173_s0, %s777_s30 }
  0x17   : > { %v171_v0 = vld [vmem:[%s1080_s6] sm:$0xf] (%p43_p3)  ;;  %v173_v1 = vld [vmem:[%s1080_s6 + $0x8] sm:$0xf] (%p43_p3)  ;;  %v175_v2 = vld [vmem:[%s1080_s6 + $0x10] sm:$0xf] (%p43_p3) }
  0x18   : > { %172 = vst [vmem:[%s150_s7] sm:$0xf] (%p43_p3), %v171_v0  ;;  %174 = vst [vmem:[%s150_s7 + $0x4] sm:$0xf] (%p43_p3), %v173_v1  ;;  %v177_v3 = vld [vmem:[%s1080_s6 + $0x18] sm:$0xf] (%p43_p3) }
  0x19   : > { %176 = vst [vmem:[%s150_s7 + $0x8] sm:$0xf] %v175_v2  ;;  %v179_v4 = vld [vmem:[%s1080_s6 + $0x20] sm:$0xf]  ;;  %v181_v5 = vld [vmem:[%s1080_s6 + $0x28] sm:$0xf] }
  0x1a   : > { %178 = vst [vmem:[%s150_s7 + $0xc] sm:$0xf] %v177_v3  ;;  %180 = vst [vmem:[%s150_s7 + $0x10] sm:$0xf] %v179_v4  ;;  %v183_v6 = vld [vmem:[%s1080_s6 + $0x30] sm:$0xf] }
  0x1b   : > { %182 = vst [vmem:[%s150_s7 + $0x14] sm:$0xf] %v181_v5  ;;  %v185_v7 = vld [vmem:[%s1080_s6 + $0x38] sm:$0xf]  ;;  %v187_v8 = vld [vmem:[%s1080_s6 + $0x40] sm:$0xf] }
  0x1c   : > { %184 = vst [vmem:[%s150_s7 + $0x18] sm:$0xf] %v183_v6  ;;  %186 = vst [vmem:[%s150_s7 + $0x1c] sm:$0xf] %v185_v7  ;;  %v189_v9 = vld [vmem:[%s1080_s6 + $0x48] sm:$0xf] }
  0x1d   : > { %188 = vst [vmem:[%s150_s7 + $0x20] sm:$0xf] %v187_v8  ;;  %v191_v10 = vld [vmem:[%s1080_s6 + $0x50] sm:$0xf]  ;;  %v193_v11 = vld [vmem:[%s1080_s6 + $0x58] sm:$0xf] }
  0x1e   : > { %190 = vst [vmem:[%s150_s7 + $0x24] sm:$0xf] %v189_v9  ;;  %192 = vst [vmem:[%s150_s7 + $0x28] sm:$0xf] %v191_v10  ;;  %v195_v12 = vld [vmem:[%s1080_s6 + $0x60] sm:$0xf] }
  0x1f   : > { %194 = vst [vmem:[%s150_s7 + $0x2c] sm:$0xf] %v193_v11  ;;  %v197_v13 = vld [vmem:[%s1080_s6 + $0x68] sm:$0xf]  ;;  %v199_v14 = vld [vmem:[%s1080_s6 + $0x70] sm:$0xf] }
  0x20   : > { %196 = vst [vmem:[%s150_s7 + $0x30] sm:$0xf] %v195_v12  ;;  %198 = vst [vmem:[%s150_s7 + $0x34] sm:$0xf] %v197_v13  ;;  %v201_v15 = vld [vmem:[%s1080_s6 + $0x78] sm:$0xf] }
  0x21   : > { %200 = vst [vmem:[%s150_s7 + $0x38] sm:$0xf] %v199_v14  ;;  %202 = vst [vmem:[%s150_s7 + $0x3c] sm:$0xf] %v201_v15 }
  0x22 PF: > { %p778_p7 = scmp.ge.s32.totalorder %s997_s18, 1  ;;  %p265_p8 = scmp.lt.s32.totalorder %s997_s18, 5 }
  0x24   : > { %p266_p9 = pnand %p778_p7, %p265_p8 }
  0x25   : > { %s272_s8 = sand.u32 (!%p266_p9), 1, %s973_s12   ;;  %s780_s9 = sshll.u32 (!%p266_p9), %s981_s14, 4 }
  0x26   : > { %269 = sbr.rel (%p266_p9) target bundleno = 327 (0x147), region = 69  ;;  %s779_s10 = sshll.u32 (!%p266_p9), %s272_s8, 6 }
  0x27   : > { %p302_p10 = scmp.lt.s32.totalorder (!%p266_p9), %s780_s9, 31  ;;  %s782_s11 = sshll.u32 (!%p266_p9), %s985_s15, 4 }
  0x28   : > { %p308_p11 = scmp.lt.s32.totalorder (!%p266_p9), %s782_s11, 31  ;;  %s1113_s12 = scalar_lea.vmem (!%p266_p9), [#allocation3], %s779_s10 }
  0x29   : > { %p784_p12 = scmp.ne.s32.totalorder (!%p266_p9), %s981_s14, 0 }
  0x2d   : > { %s1190_s9 = smov (!%p302_p10, %s780_s9), 31  ;;  %s1192_s11 = smov (!%p308_p11, %s782_s11), 31 }
  0x2e   : > { %s781_s21 = sshll.u32 %s1190_s9, 2  ;;  %s783_s26 = sshll.u32 %s1192_s11, 3  ;;  %v999_v16 = vmov (!%p784_p12), 0.0  }
  0x2f   : > { %s1106_s24 = scalar_lea.vmem %s1174_s1, %s781_s21  ;;  %s1111_s29 = scalar_lea.vmem %s1176_s3, %s783_s26  ;;  %318 = vst [vmem:[#allocation2] sm:$0xff] (!%p784_p12), %v999_v16  ;;  %319 = vst [vmem:[#allocation2 + $0x8] sm:$0xff] (!%p784_p12), %v999_v16 }
  0x30   : > { %317 = sbr.rel (%p784_p12) target bundleno = 55 (0x37), region = 77  ;;  %320 = vst [vmem:[#allocation2 + $0x10] sm:$0xff] (!%p784_p12), %v999_v16  ;;  %321 = vst [vmem:[#allocation2 + $0x18] sm:$0xff] (!%p784_p12), %v999_v16 }
  0x31   : > { %322 = vst [vmem:[#allocation2 + $0x20] sm:$0xff] (!%p784_p12), %v999_v16  ;;  %323 = vst [vmem:[#allocation2 + $0x28] sm:$0xff] (!%p784_p12), %v999_v16 }
  0x32   : > { %324 = vst [vmem:[#allocation2 + $0x30] sm:$0xff] (!%p784_p12), %v999_v16  ;;  %325 = vst [vmem:[#allocation2 + $0x38] sm:$0xff] (!%p784_p12), %v999_v16 }
  0x33   : > { %326 = vst [vmem:[#allocation2 + $0x40] sm:$0xff] (!%p784_p12), %v999_v16  ;;  %327 = vst [vmem:[#allocation2 + $0x48] sm:$0xff] (!%p784_p12), %v999_v16 }
  0x34   : > { %328 = vst [vmem:[#allocation2 + $0x50] sm:$0xff] (!%p784_p12), %v999_v16  ;;  %329 = vst [vmem:[#allocation2 + $0x58] sm:$0xff] (!%p784_p12), %v999_v16 }
  0x35   : > { %330 = vst [vmem:[#allocation2 + $0x60] sm:$0xff] (!%p784_p12), %v999_v16  ;;  %331 = vst [vmem:[#allocation2 + $0x68] sm:$0xff] (!%p784_p12), %v999_v16 }
  0x36   : > { %332 = vst [vmem:[#allocation2 + $0x70] sm:$0xff] (!%p784_p12), %v999_v16  ;;  %333 = vst [vmem:[#allocation2 + $0x78] sm:$0xff] (!%p784_p12), %v999_v16 }
  0x37 PF: > { %v927_v17 = vld [vmem:[%s1106_s24] sm:$0xff]   ;;  %v928_v18 = vld [vmem:[%s1106_s24 + $0x8] sm:$0xff]   ;;  %v929_v19 = vld [vmem:[%s1106_s24 + $0x10] sm:$0xff]   ;;  %p801_p13 = scmp.ne.s32.totalorder %s981_s14, 1 }
  0x38   : > { %822 = vmatprep.subr.bf16.mxu0 %v927_v17  ;;  %854 = vmatprep.subr.bf16.mxu1 %v927_v17  ;;  %v930_v20 = vld [vmem:[%s1106_s24 + $0x18] sm:$0xff]   ;;  %v935_v21 = vld [vmem:[%s1113_s12] sm:$0xff]   ;;  %v932_v24 = vld [vmem:[%s1106_s24 + $0x28] sm:$0xff]  }
  0x39   : > { %823 = vmatpush3.bf16.msra.mxu0 %v927_v17  ;;  %862 = vmatpush3.bf16.msra.mxu1 %v927_v17  ;;  %v936_v22 = vld [vmem:[%s1113_s12 + $0x20] sm:$0xff]   ;;  %v933_v25 = vld [vmem:[%s1106_s24 + $0x30] sm:$0xff]   ;;  %v934_v26 = vld [vmem:[%s1106_s24 + $0x38] sm:$0xff]  }
  0x3a   : > { %824 = vmatprep.subr.bf16.mxu0 %v928_v18  ;;  %855 = vmatprep.subr.bf16.mxu1 %v928_v18  ;;  %v931_v23 = vld [vmem:[%s1106_s24 + $0x20] sm:$0xff]   ;;  %v937_v27 = vld [vmem:[%s1113_s12 + $0x8] sm:$0xff]   ;;  %v939_v29 = vld [vmem:[%s1113_s12 + $0x10] sm:$0xff]  }
  0x3b   : > { %838 = vmatprep.mubr.bf16.mxu0 %v935_v21  ;;  %846 = vmatprep.mubr.bf16.mxu1 %v936_v22  ;;  %v938_v28 = vld [vmem:[%s1113_s12 + $0x28] sm:$0xff]   ;;  %v940_v30 = vld [vmem:[%s1113_s12 + $0x30] sm:$0xff]   ;;  %v941_v31 = vld [vmem:[%s1113_s12 + $0x18] sm:$0xff]  }
  0x3c   : > { %v942_v32 = vld [vmem:[%s1113_s12 + $0x38] sm:$0xff]   ;;  %v336_v33 = vld [vmem:[#allocation2 + $0x10] sm:$0xff]  ;;  %v334_v35 = vld [vmem:[#allocation2] sm:$0xff] }
  0x3d   : > { %825 = vmatpush3.bf16.msra.mxu0 %v928_v18  ;;  %863 = vmatpush3.bf16.msra.mxu1 %v928_v18  ;;  %v344_v34 = vld [vmem:[#allocation2 + $0x50] sm:$0xff]  ;;  %v342_v36 = vld [vmem:[#allocation2 + $0x40] sm:$0xff]  ;;  %v337_v39 = vld [vmem:[#allocation2 + $0x18] sm:$0xff] }
  0x3e   : > { %826 = vmatprep.subr.bf16.mxu0 %v929_v19  ;;  %856 = vmatprep.subr.bf16.mxu1 %v929_v19  ;;  %v345_v40 = vld [vmem:[#allocation2 + $0x58] sm:$0xff]  ;;  %v335_v45 = vld [vmem:[#allocation2 + $0x8] sm:$0xff]  ;;  %v340_v57 = vld [vmem:[#allocation2 + $0x30] sm:$0xff] }
  0x3f   : > { %v343_v46 = vld [vmem:[#allocation2 + $0x48] sm:$0xff]  ;;  %v348_v58 = vld [vmem:[#allocation2 + $0x70] sm:$0xff]  ;;  %v338_v59 = vld [vmem:[#allocation2 + $0x20] sm:$0xff] }
  0x40   : > { %v346_v60 = vld [vmem:[#allocation2 + $0x60] sm:$0xff]  ;;  %v341_v63 = vld [vmem:[#allocation2 + $0x38] sm:$0xff]  ;;  %v339_v5 = vld [vmem:[#allocation2 + $0x28] sm:$0xff] }
  0x41   : > { %827 = vmatpush3.bf16.msra.mxu0 %v929_v19  ;;  %864 = vmatpush3.bf16.msra.mxu1 %v929_v19  ;;  %v349_v0 = vld [vmem:[#allocation2 + $0x78] sm:$0xff]  ;;  %v347_v6 = vld [vmem:[#allocation2 + $0x68] sm:$0xff]  ;;  %v802_v18 = vld [vmem:[%s1175_s2] ss:$0 sm:$0xff] (!%p801_p13) }
  0x42   : > { %828 = vmatprep.subr.bf16.mxu0 %v930_v20  ;;  %857 = vmatprep.subr.bf16.mxu1 %v930_v20 }
  0x45   : > { %829 = vmatpush3.bf16.msra.mxu0 %v930_v20  ;;  %865 = vmatpush3.bf16.msra.mxu1 %v930_v20 }
  0x46   : > { %830 = vmatprep.subr.bf16.mxu0 %v931_v23  ;;  %858 = vmatprep.subr.bf16.mxu1 %v931_v23 }
  0x49   : > { %831 = vmatpush3.bf16.msra.mxu0 %v931_v23  ;;  %866 = vmatpush3.bf16.msra.mxu1 %v931_v23 }
  0x4a   : > { %832 = vmatprep.subr.bf16.mxu0 %v932_v24  ;;  %859 = vmatprep.subr.bf16.mxu1 %v932_v24 }
  0x4d   : > { %833 = vmatpush3.bf16.msra.mxu0 %v932_v24  ;;  %867 = vmatpush3.bf16.msra.mxu1 %v932_v24 }
  0x4e   : > { %834 = vmatprep.subr.bf16.mxu0 %v933_v25  ;;  %860 = vmatprep.subr.bf16.mxu1 %v933_v25 }
  0x51   : > { %835 = vmatpush3.bf16.msra.mxu0 %v933_v25  ;;  %868 = vmatpush3.bf16.msra.mxu1 %v933_v25 }
  0x52   : > { %836 = vmatprep.subr.bf16.mxu0 %v934_v26  ;;  %861 = vmatprep.subr.bf16.mxu1 %v934_v26 }
  0x55   : > { %837 = vmatpush3.bf16.msra.mxu0 %v934_v26  ;;  %869 = vmatpush3.bf16.msra.mxu1 %v934_v26 }
  0x58   : > { %839 = vmatmul.mubr.bf16.vlgmr.msra.gmra.mrb[0].mxu0 %v937_v27  ;;  %847 = vmatmul.mubr.bf16.vlgmr.msra.gmra.mrb[0].mxu1 %v938_v28 }
  0x59   : > { %842 = vmatprep.mubr.bf16.mxu0 %v939_v29  ;;  %850 = vmatprep.mubr.bf16.mxu1 %v940_v30 }
  0x60   : > { %843 = vmatmul.mubr.bf16.gmra.mrb[4].mxu0 %v941_v31  ;;  %851 = vmatmul.mubr.bf16.gmra.mrb[4].mxu1 %v942_v32 }
 0x12b   : > { %v840_v37 = vpop.f32.mrb[0].mxu0  ;;  %v848_v38 = vpop.f32.mrb[0].mxu1 }
 0x12c   : > { %v577_v41 = vadd.f32 %v840_v37, %v336_v33  ;;  %v585_v42 = vadd.f32 %v848_v38, %v344_v34  ;;  %v512_v43 = vpop.f32.mrb[1].mxu0  ;;  %v544_v44 = vpop.f32.mrb[1].mxu1 }
 0x12d   : > { %v575_v47 = vadd.f32 %v512_v43, %v334_v35  ;;  %v583_v48 = vadd.f32 %v544_v44, %v342_v36  ;;  %v841_v49 = vpop.f32.mrb[2].mxu0  ;;  %v849_v50 = vpop.f32.mrb[2].mxu1 }
 0x12e   : > { %593 = vst [vmem:[#allocation2 + $0x10] sm:$0xff] %v577_v41  ;;  %601 = vst [vmem:[#allocation2 + $0x50] sm:$0xff] %v585_v42  ;;  %v578_v51 = vadd.f32 %v841_v49, %v337_v39  ;;  %v586_v52 = vadd.f32 %v849_v50, %v345_v40  ;;  %v515_v53 = vpop.f32.mrb[3].mxu0  ;;  %v547_v54 = vpop.f32.mrb[3].mxu1 }
 0x12f   : > { %591 = vst [vmem:[#allocation2] sm:$0xff] %v575_v47  ;;  %599 = vst [vmem:[#allocation2 + $0x40] sm:$0xff] %v583_v48  ;;  %v576_v55 = vadd.f32 %v515_v53, %v335_v45  ;;  %v584_v56 = vadd.f32 %v547_v54, %v343_v46 }
 0x130   : > { %594 = vst [vmem:[#allocation2 + $0x18] sm:$0xff] %v578_v51  ;;  %602 = vst [vmem:[#allocation2 + $0x58] sm:$0xff] %v586_v52 }
 0x131   : > { %592 = vst [vmem:[#allocation2 + $0x8] sm:$0xff] %v576_v55  ;;  %600 = vst [vmem:[#allocation2 + $0x48] sm:$0xff] %v584_v56 }
 0x133   : > { %v844_v61 = vpop.f32.mrb[4].mxu0  ;;  %v852_v62 = vpop.f32.mrb[4].mxu1  ;;  %610 = sbr.rel (%p801_p13) target bundleno = 327 (0x147), region = 81 }
 0x134   : > { %v581_v1 = vadd.f32 %v844_v61, %v340_v57  ;;  %v589_v2 = vadd.f32 %v852_v62, %v348_v58  ;;  %v528_v3 = vpop.f32.mrb[5].mxu0  ;;  %v560_v4 = vpop.f32.mrb[5].mxu1 }
 0x135   : > { %v579_v7 = vadd.f32 %v528_v3, %v338_v59  ;;  %v587_v8 = vadd.f32 %v560_v4, %v346_v60  ;;  %v845_v9 = vpop.f32.mrb[6].mxu0  ;;  %v853_v10 = vpop.f32.mrb[6].mxu1  ;;  %v613_v22 = vld [vmem:[#allocation2 + $0x10] sm:$0xff] (!%p801_p13) }
 0x136   : > { %597 = vst [vmem:[#allocation2 + $0x30] sm:$0xff] %v581_v1  ;;  %605 = vst [vmem:[#allocation2 + $0x70] sm:$0xff] %v589_v2  ;;  %v582_v11 = vadd.f32 %v845_v9, %v341_v63  ;;  %v590_v12 = vadd.f32 %v853_v10, %v349_v0  ;;  %v531_v13 = vpop.f32.mrb[7].mxu0  ;;  %v563_v14 = vpop.f32.mrb[7].mxu1  ;;  %v611_v17 = vld [vmem:[#allocation2] sm:$0xff] (!%p801_p13)  ;;  %v636_v25 = vadd.f32 (!%p801_p13), %v802_v18, %v613_v22  ;;  %v621_v37 = vld [vmem:[#allocation2 + $0x50] sm:$0xff] (!%p801_p13) }
 0x137   : > { %595 = vst [vmem:[#allocation2 + $0x20] sm:$0xff] %v579_v7  ;;  %603 = vst [vmem:[#allocation2 + $0x60] sm:$0xff] %v587_v8  ;;  %v580_v15 = vadd.f32 %v531_v13, %v339_v5  ;;  %v588_v16 = vadd.f32 %v563_v14, %v347_v6  ;;  %v634_v20 = vadd.f32 (!%p801_p13), %v802_v18, %v611_v17  ;;  %v614_v23 = vld [vmem:[#allocation2 + $0x18] sm:$0xff] (!%p801_p13)  ;;  %v619_v35 = vld [vmem:[#allocation2 + $0x40] sm:$0xff] (!%p801_p13) }
 0x138   : > { %598 = vst [vmem:[#allocation2 + $0x38] sm:$0xff] %v582_v11  ;;  %606 = vst [vmem:[#allocation2 + $0x78] sm:$0xff] %v590_v12  ;;  %v612_v19 = vld [vmem:[#allocation2 + $0x8] sm:$0xff] (!%p801_p13)  ;;  %v637_v26 = vadd.f32 (!%p801_p13), %v802_v18, %v614_v23  ;;  %v652_v38 = vmax.f32 (!%p801_p13), %v636_v25, 0.0  ;;  %v622_v42 = vld [vmem:[#allocation2 + $0x58] sm:$0xff] (!%p801_p13)  ;;  %v642_v47 = vadd.f32 (!%p801_p13), %v802_v18, %v619_v35  ;;  %v644_v52 = vadd.f32 (!%p801_p13), %v802_v18, %v621_v37 }
 0x139   : > { %596 = vst [vmem:[#allocation2 + $0x28] sm:$0xff] %v580_v15  ;;  %604 = vst [vmem:[#allocation2 + $0x68] sm:$0xff] %v588_v16  ;;  %v635_v21 = vadd.f32 (!%p801_p13), %v802_v18, %v612_v19  ;;  %v650_v31 = vmax.f32 (!%p801_p13), %v634_v20, 0.0  ;;  %v620_v36 = vld [vmem:[#allocation2 + $0x48] sm:$0xff] (!%p801_p13)  ;;  %v645_v53 = vadd.f32 (!%p801_p13), %v802_v18, %v622_v42 }
 0x13a   : > { %v653_v39 = vmax.f32 %v637_v26, 0.0  ;;  %v643_v48 = vadd.f32 %v802_v18, %v620_v36  ;;  %668 = vst [vmem:[%s1111_s29 + $0x10] sm:$0xff] %v652_v38  ;;  %v658_v55 = vmax.f32 %v642_v47, 0.0  ;;  %v660_v59 = vmax.f32 %v644_v52, 0.0 }
 0x13b   : > { %v651_v32 = vmax.f32 %v635_v21, 0.0  ;;  %666 = vst [vmem:[%s1111_s29] sm:$0xff] %v650_v31  ;;  %v661_v60 = vmax.f32 %v645_v53, 0.0 }
 0x13c   : > { %669 = vst [vmem:[%s1111_s29 + $0x18] sm:$0xff] %v653_v39  ;;  %v659_v56 = vmax.f32 %v643_v48, 0.0  ;;  %674 = vst [vmem:[%s1111_s29 + $0x40] sm:$0xff] %v658_v55 }
 0x13d   : > { %v617_v29 = vld [vmem:[#allocation2 + $0x30] sm:$0xff]  ;;  %667 = vst [vmem:[%s1111_s29 + $0x8] sm:$0xff] %v651_v32  ;;  %676 = vst [vmem:[%s1111_s29 + $0x50] sm:$0xff] %v660_v59 }
 0x13e   : > { %v615_v24 = vld [vmem:[#allocation2 + $0x20] sm:$0xff]  ;;  %v640_v34 = vadd.f32 %v802_v18, %v617_v29  ;;  %v625_v49 = vld [vmem:[#allocation2 + $0x70] sm:$0xff]  ;;  %675 = vst [vmem:[%s1111_s29 + $0x48] sm:$0xff] %v659_v56  ;;  %677 = vst [vmem:[%s1111_s29 + $0x58] sm:$0xff] %v661_v60 }
 0x13f   : > { %v638_v27 = vadd.f32 %v802_v18, %v615_v24  ;;  %v618_v30 = vld [vmem:[#allocation2 + $0x38] sm:$0xff]  ;;  %v623_v43 = vld [vmem:[#allocation2 + $0x60] sm:$0xff]  ;;  %v648_v58 = vadd.f32 %v802_v18, %v625_v49 }
 0x140   : > { %v616_v28 = vld [vmem:[#allocation2 + $0x28] sm:$0xff]  ;;  %v641_v41 = vadd.f32 %v802_v18, %v618_v30  ;;  %v656_v46 = vmax.f32 %v640_v34, 0.0  ;;  %v626_v50 = vld [vmem:[#allocation2 + $0x78] sm:$0xff]  ;;  %v646_v54 = vadd.f32 %v802_v18, %v623_v43 }
 0x141   : > { %v639_v33 = vadd.f32 %v802_v18, %v616_v28  ;;  %v654_v40 = vmax.f32 %v638_v27, 0.0  ;;  %v624_v44 = vld [vmem:[#allocation2 + $0x68] sm:$0xff]  ;;  %v649_v62 = vadd.f32 %v802_v18, %v626_v50  ;;  %v664_v0 = vmax.f32 %v648_v58, 0.0 }
 0x142   : > { %v657_v51 = vmax.f32 %v641_v41, 0.0  ;;  %672 = vst [vmem:[%s1111_s29 + $0x30] sm:$0xff] %v656_v46  ;;  %v647_v57 = vadd.f32 %v802_v18, %v624_v44  ;;  %v662_v61 = vmax.f32 %v646_v54, 0.0 }
 0x143   : > { %v655_v45 = vmax.f32 %v639_v33, 0.0  ;;  %670 = vst [vmem:[%s1111_s29 + $0x20] sm:$0xff] %v654_v40  ;;  %v665_v1 = vmax.f32 %v649_v62, 0.0  ;;  %680 = vst [vmem:[%s1111_s29 + $0x70] sm:$0xff] %v664_v0 }
 0x144   : > { %673 = vst [vmem:[%s1111_s29 + $0x38] sm:$0xff] %v657_v51  ;;  %v663_v63 = vmax.f32 %v647_v57, 0.0  ;;  %678 = vst [vmem:[%s1111_s29 + $0x60] sm:$0xff] %v662_v61 }
 0x145   : > { %671 = vst [vmem:[%s1111_s29 + $0x28] sm:$0xff] %v655_v45  ;;  %681 = vst [vmem:[%s1111_s29 + $0x78] sm:$0xff] %v665_v1 }
 0x146   : > { %679 = vst [vmem:[%s1111_s29 + $0x68] sm:$0xff] %v663_v63 }
 0x147 PF: > { %s13_s18 = sadd.s32 1, %s997_s18   ;;  %s1177_s12 = smov %s977_s13 }
 0x148   : > { %p10_p0 = scmp.ge.s32.totalorder %s13_s18, 6   ;;  %s1178_s13 = smov %s1071_s25 }
 0x149   : > { %s1179_s14 = smov %s989_s16  ;;  %s1180_s15 = smov %s993_s17 }
 0x14a   : > { %s1181_s16 = smov %s1184_s19  ;;  %s1182_s17 = smov %s1188_s20 }
 0x14b   :  { %12 = sbr.rel (!%p10_p0) target bundleno = 4 (0x4), region = 119 }

// kernel: gcn_forward.4
= control target key start
LH: loop header
LB: loop body
LE: loop exit
PB: predicated region body
PF: predicated region fallthrough
CT: control target
= control target key end

     0   :  { %s1763_s18 = smov 0   ;;  %s1765_s19 = smov 0   ;;  %s2007_s0 = inlined_call_operand.vmem [shape: bf16[256,256], index: 0, kind: input, shape index: {}]   ;;  %s2008_s1 = inlined_call_operand.vmem [shape: bf16[256,8], index: 1, kind: input, shape index: {}]   ;;  %s2009_s2 = inlined_call_operand.vmem [shape: f32[8,128], index: 2, kind: input, shape index: {}]   ;;  %s2010_s3 = inlined_call_operand.vmem [shape: f32[1,128], index: 3, kind: input, shape index: {}]   ;;  %s2011_s4 = inlined_call_operand.vmem [shape: f32[128,128], index: 4, kind: input, shape index: {}]   ;;  %s2012_s5 = inlined_call_operand.vmem [shape: bf16[256,128], index: 5, kind: output, shape index: {}]  }
   0x1   :  { %s1767_s20 = smov 0   ;;  %s1769_s21 = smov 0  }
   0x2   :  { %s1771_s22 = smov 0   ;;  %s1773_s23 = smov 0  }
   0x3   :  { %s1775_s24 = smov 0  }
   0x4 LB: > { %s24_s25 = sadd.s32 1, %s1722_s22  ;;  %s27_s26 = sadd.s32 1, %s1726_s23  ;;  %s1730_s24 = sphi %s1775_s24, %s15_s24   ;;  %s1726_s23 = sphi %s1773_s23, %s2018_s23   ;;  %s1722_s22 = sphi %s1771_s22, %s2017_s22   ;;  %s1718_s21 = sphi %s1769_s21, %s2016_s21   ;;  %s1714_s20 = sphi %s1767_s20, %s2015_s20   ;;  %s1710_s19 = sphi %s1765_s19, %s2014_s19   ;;  %s1706_s18 = sphi %s1763_s18, %s2013_s18  }
   0x5   : > { %p25_p0 = scmp.ge.s32.totalorder %s24_s25, 2  ;;  %p43_p1 = scmp.ne.s32.totalorder %s1710_s19, %s1706_s18 }
   0x6   : > { %p44_p2 = scmp.eq.s32.totalorder %s1730_s24, 0  ;;  %s36_s30 = sadd.s32 1, %s1710_s19 }
   0x7   : > { %s2020_s25 = smov (%p25_p0, %s24_s25), 0  ;;  %s2022_s26 = smov (!%p25_p0, %s27_s26), %s1726_s23 }
   0x8   : > { %p45_p3 = por %p44_p2, %p43_p1  ;;  %p29_p4 = scmp.ge.s32.totalorder %s2022_s26, 2 }
   0x9   : > { %s32_s27 = ssub.s32 %s1722_s22, %s2020_s25  ;;  %p1232_p6 = scmp.ge.s32.totalorder %s1730_s24, 4 }
   0xa   : > { %s2024_s26 = smov (%p29_p4, %s2022_s26), 0 }
   0xb   : > { %s31_s28 = ssub.s32 %s1726_s23, %s2024_s26  ;;  %193 = sbr.rel (%p1232_p6) target bundleno = 34 (0x22), region = 28 }
   0xc   : > { %s33_s29 = sor.u32 %s32_s27, %s31_s28 }
   0xd   : > { %p34_p5 = scmp.eq.s32.totalorder %s33_s29, 0 }
   0xf   : > { %s1814_s6 = scalar_select %p34_p5, %s1710_s19, %s36_s30  }
  0x12   : > { %196 = sbr.rel (!%p45_p3) target bundleno = 34 (0x22), region = 32  ;;  %s198_s7 = sand.u32 (%p45_p3), 1, %s1710_s19  }
  0x13   : > { %s1296_s8 = sshll.u32 (%p45_p3), %s1726_s23, 5  ;;  %s1233_s9 = sshll.u32 (%p45_p3), %s198_s7, 6 }
  0x14   : > { %s203_s10 = sadd.s32 (%p45_p3), %s1722_s22, %s1296_s8  ;;  %s200_s15 = scalar_lea.vmem (%p45_p3), [#allocation3], %s1233_s9 }
  0x15   : > { %s1236_s11 = sshll.u32 (%p45_p3), %s203_s10, 2 }
  0x16   : > { %s1823_s14 = scalar_lea.vmem (%p45_p3), %s2007_s0, %s1236_s11 }
  0x17   : > { %v221_v0 = vld [vmem:[%s1823_s14] sm:$0xf] (%p45_p3)  ;;  %v223_v1 = vld [vmem:[%s1823_s14 + $0x8] sm:$0xf] (%p45_p3)  ;;  %v225_v2 = vld [vmem:[%s1823_s14 + $0x10] sm:$0xf] (%p45_p3) }
  0x18   : > { %222 = vst [vmem:[%s200_s15] sm:$0xf] (%p45_p3), %v221_v0  ;;  %224 = vst [vmem:[%s200_s15 + $0x4] sm:$0xf] (%p45_p3), %v223_v1  ;;  %v227_v3 = vld [vmem:[%s1823_s14 + $0x18] sm:$0xf] (%p45_p3) }
  0x19   : > { %226 = vst [vmem:[%s200_s15 + $0x8] sm:$0xf] %v225_v2  ;;  %v229_v4 = vld [vmem:[%s1823_s14 + $0x20] sm:$0xf]  ;;  %v231_v5 = vld [vmem:[%s1823_s14 + $0x28] sm:$0xf] }
  0x1a   : > { %228 = vst [vmem:[%s200_s15 + $0xc] sm:$0xf] %v227_v3  ;;  %230 = vst [vmem:[%s200_s15 + $0x10] sm:$0xf] %v229_v4  ;;  %v233_v6 = vld [vmem:[%s1823_s14 + $0x30] sm:$0xf] }
  0x1b   : > { %232 = vst [vmem:[%s200_s15 + $0x14] sm:$0xf] %v231_v5  ;;  %v235_v7 = vld [vmem:[%s1823_s14 + $0x38] sm:$0xf]  ;;  %v237_v8 = vld [vmem:[%s1823_s14 + $0x40] sm:$0xf] }
  0x1c   : > { %234 = vst [vmem:[%s200_s15 + $0x18] sm:$0xf] %v233_v6  ;;  %236 = vst [vmem:[%s200_s15 + $0x1c] sm:$0xf] %v235_v7  ;;  %v239_v9 = vld [vmem:[%s1823_s14 + $0x48] sm:$0xf] }
  0x1d   : > { %238 = vst [vmem:[%s200_s15 + $0x20] sm:$0xf] %v237_v8  ;;  %v241_v10 = vld [vmem:[%s1823_s14 + $0x50] sm:$0xf]  ;;  %v243_v11 = vld [vmem:[%s1823_s14 + $0x58] sm:$0xf] }
  0x1e   : > { %240 = vst [vmem:[%s200_s15 + $0x24] sm:$0xf] %v239_v9  ;;  %242 = vst [vmem:[%s200_s15 + $0x28] sm:$0xf] %v241_v10  ;;  %v245_v12 = vld [vmem:[%s1823_s14 + $0x60] sm:$0xf] }
  0x1f   : > { %244 = vst [vmem:[%s200_s15 + $0x2c] sm:$0xf] %v243_v11  ;;  %v247_v13 = vld [vmem:[%s1823_s14 + $0x68] sm:$0xf]  ;;  %v249_v14 = vld [vmem:[%s1823_s14 + $0x70] sm:$0xf] }
  0x20   : > { %246 = vst [vmem:[%s200_s15 + $0x30] sm:$0xf] %v245_v12  ;;  %248 = vst [vmem:[%s200_s15 + $0x34] sm:$0xf] %v247_v13  ;;  %v251_v15 = vld [vmem:[%s1823_s14 + $0x78] sm:$0xf] }
  0x21   : > { %250 = vst [vmem:[%s200_s15 + $0x38] sm:$0xf] %v249_v14  ;;  %252 = vst [vmem:[%s200_s15 + $0x3c] sm:$0xf] %v251_v15 }
  0x22 PF: > { %p1237_p7 = scmp.ge.s32.totalorder %s1730_s24, 1  ;;  %p315_p8 = scmp.lt.s32.totalorder %s1730_s24, 5 }
  0x24   : > { %p316_p9 = pnand %p1237_p7, %p315_p8 }
  0x25   : > { %s322_s16 = sand.u32 (!%p316_p9), 1, %s1706_s18   ;;  %s1239_s17 = sshll.u32 (!%p316_p9), %s1714_s20, 4 }
  0x26   : > { %319 = sbr.rel (%p316_p9) target bundleno = 775 (0x307), region = 77  ;;  %s1238_s27 = sshll.u32 (!%p316_p9), %s322_s16, 6 }
  0x27   : > { %p356_p10 = scmp.lt.s32.totalorder (!%p316_p9), %s1239_s17, 31  ;;  %s1241_s28 = sshll.u32 (!%p316_p9), %s1718_s21, 4 }
  0x28   : > { %p362_p11 = scmp.lt.s32.totalorder (!%p316_p9), %s1241_s28, 31  ;;  %s1856_s18 = scalar_lea.vmem (!%p316_p9), [#allocation3], %s1238_s27 }
  0x29   : > { %p1243_p12 = scmp.ne.s32.totalorder (!%p316_p9), %s1714_s20, 0 }
  0x2d   : > { %s2026_s17 = smov (!%p356_p10, %s1239_s17), 31  ;;  %s2028_s28 = smov (!%p362_p11, %s1241_s28), 31 }
  0x2e   : > { %s1240_s29 = sshll.u32 %s2026_s17, 2  ;;  %s1242_s9 = sshll.u32 %s2028_s28, 2  ;;  %vm372_vm0 = vcmask (!%p1243_p12), 64512   ;;  %v1732_v16 = vmov (!%p1243_p12), 0.0  }
  0x2f   : > { %s1849_s8 = scalar_lea.vmem %s2008_s1, %s1240_s29  ;;  %s1854_s12 = scalar_lea.vmem %s2012_s5, %s1242_s9  ;;  %373 = vst.msk [vmem:[#allocation2] sm:$0xff] (!%p1243_p12), %vm372_vm0, %v1732_v16  ;;  %374 = vst.msk [vmem:[#allocation2 + $0x8] sm:$0xff] (!%p1243_p12), %vm372_vm0, %v1732_v16 }
  0x30   : > { %371 = sbr.rel (%p1243_p12) target bundleno = 55 (0x37), region = 85  ;;  %375 = vst.msk [vmem:[#allocation2 + $0x10] sm:$0xff] (!%p1243_p12), %vm372_vm0, %v1732_v16  ;;  %376 = vst.msk [vmem:[#allocation2 + $0x18] sm:$0xff] (!%p1243_p12), %vm372_vm0, %v1732_v16 }
  0x31   : > { %377 = vst.msk [vmem:[#allocation2 + $0x20] sm:$0xff] (!%p1243_p12), %vm372_vm0, %v1732_v16  ;;  %378 = vst.msk [vmem:[#allocation2 + $0x28] sm:$0xff] (!%p1243_p12), %vm372_vm0, %v1732_v16 }
  0x32   : > { %379 = vst.msk [vmem:[#allocation2 + $0x30] sm:$0xff] (!%p1243_p12), %vm372_vm0, %v1732_v16  ;;  %380 = vst.msk [vmem:[#allocation2 + $0x38] sm:$0xff] (!%p1243_p12), %vm372_vm0, %v1732_v16 }
  0x33   : > { %381 = vst.msk [vmem:[#allocation2 + $0x40] sm:$0xff] (!%p1243_p12), %vm372_vm0, %v1732_v16  ;;  %382 = vst.msk [vmem:[#allocation2 + $0x48] sm:$0xff] (!%p1243_p12), %vm372_vm0, %v1732_v16 }
  0x34   : > { %383 = vst.msk [vmem:[#allocation2 + $0x50] sm:$0xff] (!%p1243_p12), %vm372_vm0, %v1732_v16  ;;  %384 = vst.msk [vmem:[#allocation2 + $0x58] sm:$0xff] (!%p1243_p12), %vm372_vm0, %v1732_v16 }
  0x35   : > { %385 = vst.msk [vmem:[#allocation2 + $0x60] sm:$0xff] (!%p1243_p12), %vm372_vm0, %v1732_v16  ;;  %386 = vst.msk [vmem:[#allocation2 + $0x68] sm:$0xff] (!%p1243_p12), %vm372_vm0, %v1732_v16 }
  0x36   : > { %387 = vst.msk [vmem:[#allocation2 + $0x70] sm:$0xff] (!%p1243_p12), %vm372_vm0, %v1732_v16  ;;  %388 = vst.msk [vmem:[#allocation2 + $0x78] sm:$0xff] (!%p1243_p12), %vm372_vm0, %v1732_v16 }
  0x37 PF: > { %v1660_v17 = vld [vmem:[%s1849_s8] sm:$0xff]   ;;  %v1661_v18 = vld [vmem:[%s1849_s8 + $0x8] sm:$0xff]   ;;  %v1662_v19 = vld [vmem:[%s1849_s8 + $0x10] sm:$0xff]   ;;  %vm646_vm1 = vcmask 64512   ;;  %p1260_p13 = scmp.ne.s32.totalorder %s1714_s20, 1 }
  0x38   : > { %1425 = vmatprep.subr.bf16.mxu0 %v1660_v17  ;;  %1571 = vmatprep.subr.bf16.mxu1 %v1660_v17  ;;  %v1663_v20 = vld [vmem:[%s1849_s8 + $0x18] sm:$0xff]   ;;  %v1668_v21 = vld [vmem:[%s1856_s18] sm:$0xff]   ;;  %v1665_v24 = vld [vmem:[%s1849_s8 + $0x28] sm:$0xff]  }
  0x39   : > { %1426 = vmatpush3.bf16.msra.mxu0 %v1660_v17  ;;  %1579 = vmatpush3.bf16.msra.mxu1 %v1660_v17  ;;  %v1669_v22 = vld [vmem:[%s1856_s18 + $0x20] sm:$0xff]   ;;  %v1666_v25 = vld [vmem:[%s1849_s8 + $0x30] sm:$0xff]   ;;  %v1667_v26 = vld [vmem:[%s1849_s8 + $0x38] sm:$0xff]  }
  0x3a   : > { %1427 = vmatprep.subr.bf16.mxu0 %v1661_v18  ;;  %1572 = vmatprep.subr.bf16.mxu1 %v1661_v18  ;;  %v1664_v23 = vld [vmem:[%s1849_s8 + $0x20] sm:$0xff]   ;;  %v1670_v27 = vld [vmem:[%s1856_s18 + $0x8] sm:$0xff]   ;;  %v1672_v29 = vld [vmem:[%s1856_s18 + $0x10] sm:$0xff]  }
  0x3b   : > { %1441 = vmatprep.mubr.bf16.mxu0 %v1668_v21  ;;  %1449 = vmatprep.mubr.bf16.mxu1 %v1669_v22  ;;  %v1671_v28 = vld [vmem:[%s1856_s18 + $0x28] sm:$0xff]   ;;  %v1673_v30 = vld [vmem:[%s1856_s18 + $0x30] sm:$0xff]   ;;  %v1674_v31 = vld [vmem:[%s1856_s18 + $0x18] sm:$0xff]  }
  0x3c   : > { %v1675_v32 = vld [vmem:[%s1856_s18 + $0x38] sm:$0xff]   ;;  %v391_v33 = vld [vmem:[#allocation2 + $0x10] sm:$0xff]  ;;  %v389_v35 = vld [vmem:[#allocation2] sm:$0xff] }
  0x3d   : > { %1428 = vmatpush3.bf16.msra.mxu0 %v1661_v18  ;;  %1580 = vmatpush3.bf16.msra.mxu1 %v1661_v18  ;;  %v399_v34 = vld [vmem:[#allocation2 + $0x50] sm:$0xff]  ;;  %v397_v36 = vld [vmem:[#allocation2 + $0x40] sm:$0xff]  ;;  %v392_v39 = vld [vmem:[#allocation2 + $0x18] sm:$0xff] }
  0x3e   : > { %1429 = vmatprep.subr.bf16.mxu0 %v1662_v19  ;;  %1573 = vmatprep.subr.bf16.mxu1 %v1662_v19  ;;  %v400_v40 = vld [vmem:[#allocation2 + $0x58] sm:$0xff]  ;;  %v390_v45 = vld [vmem:[#allocation2 + $0x8] sm:$0xff]  ;;  %v395_v57 = vld [vmem:[#allocation2 + $0x30] sm:$0xff] }
  0x3f   : > { %v398_v46 = vld [vmem:[#allocation2 + $0x48] sm:$0xff]  ;;  %v403_v58 = vld [vmem:[#allocation2 + $0x70] sm:$0xff]  ;;  %v393_v59 = vld [vmem:[#allocation2 + $0x20] sm:$0xff] }
  0x40   : > { %v401_v60 = vld [vmem:[#allocation2 + $0x60] sm:$0xff]  ;;  %v396_v63 = vld [vmem:[#allocation2 + $0x38] sm:$0xff]  ;;  %v394_v5 = vld [vmem:[#allocation2 + $0x28] sm:$0xff] }
  0x41   : > { %1430 = vmatpush3.bf16.msra.mxu0 %v1662_v19  ;;  %1581 = vmatpush3.bf16.msra.mxu1 %v1662_v19  ;;  %v404_v0 = vld [vmem:[#allocation2 + $0x78] sm:$0xff]  ;;  %v402_v6 = vld [vmem:[#allocation2 + $0x68] sm:$0xff]  ;;  %v683_v17 = vld [vmem:[%s2009_s2] sm:$0xff] (!%p1260_p13) }
  0x42   : > { %1431 = vmatprep.subr.bf16.mxu0 %v1663_v20  ;;  %1574 = vmatprep.subr.bf16.mxu1 %v1663_v20 }
  0x45   : > { %1432 = vmatpush3.bf16.msra.mxu0 %v1663_v20  ;;  %1582 = vmatpush3.bf16.msra.mxu1 %v1663_v20 }
  0x46   : > { %1433 = vmatprep.subr.bf16.mxu0 %v1664_v23  ;;  %1575 = vmatprep.subr.bf16.mxu1 %v1664_v23 }
  0x49   : > { %1434 = vmatpush3.bf16.msra.mxu0 %v1664_v23  ;;  %1583 = vmatpush3.bf16.msra.mxu1 %v1664_v23  ;;  %v900_v23 = vld [vmem:[%s2011_s4] sm:$0xff] (!%p1260_p13) }
  0x4a   : > { %1435 = vmatprep.subr.bf16.mxu0 %v1665_v24  ;;  %1576 = vmatprep.subr.bf16.mxu1 %v1665_v24 }
  0x4d   : > { %1436 = vmatpush3.bf16.msra.mxu0 %v1665_v24  ;;  %1584 = vmatpush3.bf16.msra.mxu1 %v1665_v24  ;;  %v901_v24 = vld [vmem:[%s2011_s4 + $0x8] sm:$0xff] (!%p1260_p13) }
  0x4e   : > { %1437 = vmatprep.subr.bf16.mxu0 %v1666_v25  ;;  %1577 = vmatprep.subr.bf16.mxu1 %v1666_v25 }
  0x51   : > { %1438 = vmatpush3.bf16.msra.mxu0 %v1666_v25  ;;  %1585 = vmatpush3.bf16.msra.mxu1 %v1666_v25  ;;  %v902_v25 = vld [vmem:[%s2011_s4 + $0x10] sm:$0xff] (!%p1260_p13) }
  0x52   : > { %1439 = vmatprep.subr.bf16.mxu0 %v1667_v26  ;;  %1578 = vmatprep.subr.bf16.mxu1 %v1667_v26 }
  0x55   : > { %1440 = vmatpush3.bf16.msra.mxu0 %v1667_v26  ;;  %1586 = vmatpush3.bf16.msra.mxu1 %v1667_v26  ;;  %v903_v26 = vld [vmem:[%s2011_s4 + $0x18] sm:$0xff] (!%p1260_p13) }
  0x56   : > { %1457 = vmatprep.subr.mxu0 (!%p1260_p13), %v683_v17 }
  0x58   : > { %1442 = vmatmul.mubr.bf16.vlgmr.msra.gmra.mrb[0].mxu0 %v1670_v27  ;;  %1450 = vmatmul.mubr.bf16.vlgmr.msra.gmra.mrb[0].mxu1 %v1671_v28  ;;  %v1539_v27 = vpack.c.bf16 (!%p1260_p13), %v901_v24, %v900_v23  ;;  %v1543_v28 = vpack.c.bf16 (!%p1260_p13), %v903_v26, %v902_v25 }
  0x59   : > { %1445 = vmatprep.mubr.bf16.mxu0 %v1672_v29  ;;  %1453 = vmatprep.mubr.bf16.mxu1 %v1673_v30  ;;  %v904_v30 = vld [vmem:[%s2011_s4 + $0x20] sm:$0xff] (!%p1260_p13) }
  0x5a   : > { %1458 = vmatpush3.msra.mxu0 (!%p1260_p13), %v683_v17  ;;  %1587 = vmatprep.subr.bf16.mxu1 (!%p1260_p13), %v1539_v27 }
  0x5b   : > { %1540 = vmatprep.subr.bf16.mxu0 (!%p1260_p13), %v1539_v27  ;;  %1595 = vmatpush3.bf16.msra.mxu1 (!%p1260_p13), %v1539_v27 }
  0x5c   : > { %1588 = vmatprep.subr.bf16.mxu1 (!%p1260_p13), %v1543_v28 }
  0x5f   : > { %1596 = vmatpush3.bf16.msra.mxu1 (!%p1260_p13), %v1543_v28 }
  0x60   : > { %1446 = vmatmul.mubr.bf16.gmra.mrb[4].mxu0 %v1674_v31  ;;  %1454 = vmatmul.mubr.bf16.gmra.mrb[4].mxu1 %v1675_v32  ;;  %v905_v31 = vld [vmem:[%s2011_s4 + $0x28] sm:$0xff] (!%p1260_p13) }
 0x12b   : > { %v1443_v37 = vpop.f32.mrb[0].mxu0  ;;  %v1451_v38 = vpop.f32.mrb[0].mxu1 }
 0x12c   : > { %v632_v41 = vadd.f32 %v1443_v37, %v391_v33  ;;  %v640_v42 = vadd.f32 %v1451_v38, %v399_v34  ;;  %v567_v43 = vpop.f32.mrb[1].mxu0  ;;  %v599_v44 = vpop.f32.mrb[1].mxu1  ;;  %v1547_v33 = vpack.c.bf16 (!%p1260_p13), %v905_v31, %v904_v30 }
 0x12d   : > { %v630_v47 = vadd.f32 %v567_v43, %v389_v35  ;;  %v638_v48 = vadd.f32 %v599_v44, %v397_v36  ;;  %v1444_v49 = vpop.f32.mrb[2].mxu0  ;;  %v1452_v50 = vpop.f32.mrb[2].mxu1  ;;  %v906_v35 = vld [vmem:[%s2011_s4 + $0x30] sm:$0xff] (!%p1260_p13)  ;;  %v907_v36 = vld [vmem:[%s2011_s4 + $0x38] sm:$0xff] (!%p1260_p13) }
 0x12e   : > { %649 = vst.msk [vmem:[#allocation2 + $0x10] sm:$0xff] %vm646_vm1, %v632_v41  ;;  %657 = vst.msk [vmem:[#allocation2 + $0x50] sm:$0xff] %vm646_vm1, %v640_v42  ;;  %v633_v51 = vadd.f32 %v1444_v49, %v392_v39  ;;  %v641_v52 = vadd.f32 %v1452_v50, %v400_v40  ;;  %v570_v53 = vpop.f32.mrb[3].mxu0  ;;  %v602_v54 = vpop.f32.mrb[3].mxu1  ;;  %v1551_v38 = vpack.c.bf16 (!%p1260_p13), %v907_v36, %v906_v35  ;;  %v908_v40 = vld [vmem:[%s2011_s4 + $0x40] sm:$0xff] (!%p1260_p13)  ;;  %v909_v41 = vld [vmem:[%s2011_s4 + $0x48] sm:$0xff] (!%p1260_p13)  ;;  %1589 = vmatprep.subr.bf16.mxu1 (!%p1260_p13), %v1547_v33 }
 0x12f   : > { %647 = vst.msk [vmem:[#allocation2] sm:$0xff] %vm646_vm1, %v630_v47  ;;  %655 = vst.msk [vmem:[#allocation2 + $0x40] sm:$0xff] %vm646_vm1, %v638_v48  ;;  %v631_v55 = vadd.f32 %v570_v53, %v390_v45  ;;  %v639_v56 = vadd.f32 %v602_v54, %v398_v46  ;;  %1597 = vmatpush3.bf16.msra.mxu1 (!%p1260_p13), %v1547_v33  ;;  %v1555_v43 = vpack.c.bf16 (!%p1260_p13), %v909_v41, %v908_v40  ;;  %v910_v45 = vld [vmem:[%s2011_s4 + $0x50] sm:$0xff] (!%p1260_p13)  ;;  %v911_v46 = vld [vmem:[%s2011_s4 + $0x58] sm:$0xff] (!%p1260_p13) }
 0x130   : > { %650 = vst.msk [vmem:[#allocation2 + $0x18] sm:$0xff] %vm646_vm1, %v633_v51  ;;  %658 = vst.msk [vmem:[#allocation2 + $0x58] sm:$0xff] %vm646_vm1, %v641_v52  ;;  %1590 = vmatprep.subr.bf16.mxu1 (!%p1260_p13), %v1551_v38  ;;  %v1559_v48 = vpack.c.bf16 (!%p1260_p13), %v911_v46, %v910_v45  ;;  %v912_v50 = vld [vmem:[%s2011_s4 + $0x60] sm:$0xff] (!%p1260_p13)  ;;  %v913_v51 = vld [vmem:[%s2011_s4 + $0x68] sm:$0xff] (!%p1260_p13) }
 0x131   : > { %648 = vst.msk [vmem:[#allocation2 + $0x8] sm:$0xff] %vm646_vm1, %v631_v55  ;;  %656 = vst.msk [vmem:[#allocation2 + $0x48] sm:$0xff] %vm646_vm1, %v639_v56  ;;  %v1563_v53 = vpack.c.bf16 (!%p1260_p13), %v913_v51, %v912_v50  ;;  %v914_v55 = vld [vmem:[%s2011_s4 + $0x70] sm:$0xff] (!%p1260_p13)  ;;  %v915_v56 = vld [vmem:[%s2011_s4 + $0x78] sm:$0xff] (!%p1260_p13) }
 0x133   : > { %v1447_v61 = vpop.f32.mrb[4].mxu0  ;;  %v1455_v62 = vpop.f32.mrb[4].mxu1  ;;  %666 = sbr.rel (%p1260_p13) target bundleno = 775 (0x307), region = 89  ;;  %1598 = vmatpush3.bf16.msra.mxu1 (!%p1260_p13), %v1551_v38 }
 0x134   : > { %v636_v1 = vadd.f32 %v1447_v61, %v395_v57  ;;  %v644_v2 = vadd.f32 %v1455_v62, %v403_v58  ;;  %v583_v3 = vpop.f32.mrb[5].mxu0  ;;  %v615_v4 = vpop.f32.mrb[5].mxu1  ;;  %1591 = vmatprep.subr.bf16.mxu1 (!%p1260_p13), %v1555_v43  ;;  %v1567_v57 = vpack.c.bf16 (!%p1260_p13), %v915_v56, %v914_v55  ;;  %v1261_v58 = vld [vmem:[%s2010_s3] ss:$0 sm:$0xff] (!%p1260_p13) }
 0x135   : > { %v634_v7 = vadd.f32 %v583_v3, %v393_v59  ;;  %v642_v8 = vadd.f32 %v615_v4, %v401_v60  ;;  %v1448_v9 = vpop.f32.mrb[6].mxu0  ;;  %v1456_v10 = vpop.f32.mrb[6].mxu1  ;;  %v669_v20 = vld [vmem:[#allocation2 + $0x10] sm:$0xff] (!%p1260_p13) }
 0x136   : > { %653 = vst.msk [vmem:[#allocation2 + $0x30] sm:$0xff] %vm646_vm1, %v636_v1  ;;  %661 = vst.msk [vmem:[#allocation2 + $0x70] sm:$0xff] %vm646_vm1, %v644_v2  ;;  %v637_v11 = vadd.f32 %v1448_v9, %v396_v63  ;;  %v645_v12 = vadd.f32 %v1456_v10, %v404_v0  ;;  %v586_v13 = vpop.f32.mrb[7].mxu0  ;;  %v618_v14 = vpop.f32.mrb[7].mxu1  ;;  %v667_v18 = vld [vmem:[#allocation2] sm:$0xff] (!%p1260_p13)  ;;  %v677_v42 = vld [vmem:[#allocation2 + $0x50] sm:$0xff] (!%p1260_p13) }
 0x137   : > { %651 = vst.msk [vmem:[#allocation2 + $0x20] sm:$0xff] %vm646_vm1, %v634_v7  ;;  %659 = vst.msk [vmem:[#allocation2 + $0x60] sm:$0xff] %vm646_vm1, %v642_v8  ;;  %v635_v15 = vadd.f32 %v586_v13, %v394_v5  ;;  %v643_v16 = vadd.f32 %v618_v14, %v402_v6  ;;  %1459 = vmatprep.mubr.msk.f32.mxu0 (!%p1260_p13), %vm646_vm1, %v667_v18  ;;  %v670_v21 = vld [vmem:[#allocation2 + $0x18] sm:$0xff] (!%p1260_p13)  ;;  %v675_v37 = vld [vmem:[#allocation2 + $0x40] sm:$0xff] (!%p1260_p13)  ;;  %1599 = vmatpush3.bf16.msra.mxu1 (!%p1260_p13), %v1555_v43 }
 0x138   : > { %654 = vst.msk [vmem:[#allocation2 + $0x38] sm:$0xff] %vm646_vm1, %v637_v11  ;;  %662 = vst.msk [vmem:[#allocation2 + $0x78] sm:$0xff] %vm646_vm1, %v645_v12  ;;  %v668_v19 = vld [vmem:[#allocation2 + $0x8] sm:$0xff] (!%p1260_p13)  ;;  %v678_v44 = vld [vmem:[#allocation2 + $0x58] sm:$0xff] (!%p1260_p13)  ;;  %1592 = vmatprep.subr.bf16.mxu1 (!%p1260_p13), %v1559_v48 }
 0x139   : > { %652 = vst.msk [vmem:[#allocation2 + $0x28] sm:$0xff] %vm646_vm1, %v635_v15  ;;  %660 = vst.msk [vmem:[#allocation2 + $0x68] sm:$0xff] %vm646_vm1, %v643_v16  ;;  %1460 = vmatmul.mubr.msk.f32.vlgmr.msra.gmra.mrb[0].mxu0 (!%p1260_p13), %vm646_vm1, %v668_v19  ;;  %v676_v39 = vld [vmem:[#allocation2 + $0x48] sm:$0xff] (!%p1260_p13) }
 0x13a   : > { %1462 = vmatprep.mubr.msk.f32.mxu0 %vm646_vm1, %v669_v20  ;;  %1542 = vmatpush3.bf16.msra.mxu0 %v1539_v27 }
 0x13b   : > { %1544 = vmatprep.subr.bf16.mxu0 %v1543_v28  ;;  %1600 = vmatpush3.bf16.msra.mxu1 %v1559_v48 }
 0x13c   : > { %1593 = vmatprep.subr.bf16.mxu1 %v1563_v53 }
 0x13d   : > { %1463 = vmatmul.mubr.msk.f32.gmra.mrb[2].mxu0 %vm646_vm1, %v670_v21  ;;  %v673_v32 = vld [vmem:[#allocation2 + $0x30] sm:$0xff] }
 0x13e   : > { %v671_v22 = vld [vmem:[#allocation2 + $0x20] sm:$0xff]  ;;  %1546 = vmatpush3.bf16.msra.mxu0 %v1543_v28  ;;  %v681_v52 = vld [vmem:[#allocation2 + $0x70] sm:$0xff] }
 0x13f   : > { %1465 = vmatprep.mubr.msk.f32.mxu0 %vm646_vm1, %v671_v22  ;;  %v674_v34 = vld [vmem:[#allocation2 + $0x38] sm:$0xff]  ;;  %1548 = vmatprep.subr.bf16.mxu0 %v1547_v33  ;;  %v679_v47 = vld [vmem:[#allocation2 + $0x60] sm:$0xff] }
 0x140   : > { %v672_v29 = vld [vmem:[#allocation2 + $0x28] sm:$0xff]  ;;  %v682_v54 = vld [vmem:[#allocation2 + $0x78] sm:$0xff]  ;;  %1601 = vmatpush3.bf16.msra.mxu1 %v1563_v53 }
 0x141   : > { %1466 = vmatmul.mubr.msk.f32.gmra.mrb[4].mxu0 %vm646_vm1, %v672_v29  ;;  %v680_v49 = vld [vmem:[#allocation2 + $0x68] sm:$0xff]  ;;  %1594 = vmatprep.subr.bf16.mxu1 %v1567_v57 }
 0x142   : > { %1468 = vmatprep.mubr.msk.f32.mxu0 %vm646_vm1, %v673_v32  ;;  %1550 = vmatpush3.bf16.msra.mxu0 %v1547_v33 }
 0x143   : > { %1552 = vmatprep.subr.bf16.mxu0 %v1551_v38 }
 0x144   : > { %1602 = vmatpush3.bf16.msra.mxu1 %v1567_v57 }
 0x145   : > { %1469 = vmatmul.mubr.msk.f32.gmra.mrb[6].mxu0 %vm646_vm1, %v674_v34 }
 0x146   : > { %1471 = vmatprep.mubr.msk.f32.mxu0 %vm646_vm1, %v675_v37  ;;  %1554 = vmatpush3.bf16.msra.mxu0 %v1551_v38 }
 0x147   : > { %1556 = vmatprep.subr.bf16.mxu0 %v1555_v43 }
 0x149   : > { %1472 = vmatmul.mubr.msk.f32.gmra.mrb[8].mxu0 %vm646_vm1, %v676_v39 }
 0x14a   : > { %1474 = vmatprep.mubr.msk.f32.mxu0 %vm646_vm1, %v677_v42  ;;  %1558 = vmatpush3.bf16.msra.mxu0 %v1555_v43 }
 0x14b   : > { %1560 = vmatprep.subr.bf16.mxu0 %v1559_v48 }
 0x14d   : > { %1475 = vmatmul.mubr.msk.f32.gmra.mrb[10].mxu0 %vm646_vm1, %v678_v44 }
 0x14e   : > { %1477 = vmatprep.mubr.msk.f32.mxu0 %vm646_vm1, %v679_v47  ;;  %1562 = vmatpush3.bf16.msra.mxu0 %v1559_v48 }
 0x14f   : > { %1564 = vmatprep.subr.bf16.mxu0 %v1563_v53 }
 0x151   : > { %1478 = vmatmul.mubr.msk.f32.gmra.mrb[12].mxu0 %vm646_vm1, %v680_v49 }
 0x152   : > { %1480 = vmatprep.mubr.msk.f32.mxu0 %vm646_vm1, %v681_v52  ;;  %1566 = vmatpush3.bf16.msra.mxu0 %v1563_v53 }
 0x153   : > { %1568 = vmatprep.subr.bf16.mxu0 %v1567_v57 }
 0x155   : > { %1481 = vmatmul.mubr.msk.f32.gmra.mrb[14].mxu0 %vm646_vm1, %v682_v54 }
 0x156   : > { %1570 = vmatpush3.bf16.msra.mxu0 %v1567_v57 }
 0x20c   : > { %v1461_v59 = vpop.f32.mrb[0].mxu0 }
 0x20d   : > { %v811_v60 = vadd.f32 %v1461_v59, %v1261_v58  ;;  %v805_v61 = vpop.f32.mrb[1].mxu0 }
 0x20e   : > { %v806_v62 = vadd.f32 %v1261_v58, %v805_v61 }
 0x20f   : > { %v885_v1 = vmax.f32 %v811_v60, 0.0 }
 0x210   : > { %v884_v63 = vmax.f32 %v806_v62, 0.0  ;;  %v1464_v0 = vpop.f32.mrb[2].mxu0 }
 0x211   : > { %v821_v2 = vadd.f32 %v1464_v0, %v1261_v58  ;;  %v815_v3 = vpop.f32.mrb[3].mxu0 }
 0x212   : > { %v816_v4 = vadd.f32 %v1261_v58, %v815_v3  ;;  %1515 = vmatprep.mubr.f32.mxu0 %v884_v63 }
 0x213   : > { %1516 = vmatmul.mubr.f32.vlgmr.msra.gmra.mrb[16].mxu0 %v885_v1  ;;  %v887_v7 = vmax.f32 %v821_v2, 0.0 }
 0x214   : > { %v886_v5 = vmax.f32 %v816_v4, 0.0  ;;  %v1467_v6 = vpop.f32.mrb[4].mxu0 }
 0x215   : > { %v831_v8 = vadd.f32 %v1467_v6, %v1261_v58  ;;  %v825_v9 = vpop.f32.mrb[5].mxu0 }
 0x216   : > { %v826_v10 = vadd.f32 %v1261_v58, %v825_v9  ;;  %1518 = vmatprep.mubr.f32.mxu0 %v886_v5 }
 0x217   : > { %1519 = vmatmul.mubr.f32.gmra.mrb[18].mxu0 %v887_v7  ;;  %v889_v13 = vmax.f32 %v831_v8, 0.0 }
 0x218   : > { %v888_v11 = vmax.f32 %v826_v10, 0.0  ;;  %v1470_v12 = vpop.f32.mrb[6].mxu0 }
 0x219   : > { %v841_v14 = vadd.f32 %v1470_v12, %v1261_v58  ;;  %v835_v15 = vpop.f32.mrb[7].mxu0 }
 0x21a   : > { %1521 = vmatprep.mubr.f32.mxu0 %v888_v11  ;;  %v836_v16 = vadd.f32 %v1261_v58, %v835_v15 }
 0x21b   : > { %1522 = vmatmul.mubr.f32.gmra.mrb[20].mxu0 %v889_v13  ;;  %v891_v19 = vmax.f32 %v841_v14, 0.0 }
 0x21c   : > { %v1473_v17 = vpop.f32.mrb[8].mxu0  ;;  %v890_v18 = vmax.f32 %v836_v16, 0.0 }
 0x21d   : > { %v851_v20 = vadd.f32 %v1473_v17, %v1261_v58  ;;  %v845_v21 = vpop.f32.mrb[9].mxu0 }
 0x21e   : > { %v846_v22 = vadd.f32 %v1261_v58, %v845_v21  ;;  %1524 = vmatprep.mubr.f32.mxu1 %v890_v18 }
 0x21f   : > { %1525 = vmatmul.mubr.f32.vlgmr.msra.gmra.mrb[0].mxu1 %v891_v19  ;;  %v893_v25 = vmax.f32 %v851_v20, 0.0 }
 0x220   : > { %v892_v23 = vmax.f32 %v846_v22, 0.0  ;;  %v1476_v24 = vpop.f32.mrb[10].mxu0 }
 0x221   : > { %v861_v26 = vadd.f32 %v1476_v24, %v1261_v58  ;;  %v855_v27 = vpop.f32.mrb[11].mxu0 }
 0x222   : > { %v856_v28 = vadd.f32 %v1261_v58, %v855_v27  ;;  %1527 = vmatprep.mubr.f32.mxu1 %v892_v23 }
 0x223   : > { %1528 = vmatmul.mubr.f32.gmra.mrb[2].mxu1 %v893_v25  ;;  %v895_v31 = vmax.f32 %v861_v26, 0.0 }
 0x224   : > { %v894_v29 = vmax.f32 %v856_v28, 0.0  ;;  %v1479_v30 = vpop.f32.mrb[12].mxu0 }
 0x225   : > { %v871_v32 = vadd.f32 %v1479_v30, %v1261_v58  ;;  %v865_v33 = vpop.f32.mrb[13].mxu0 }
 0x226   : > { %v866_v34 = vadd.f32 %v1261_v58, %v865_v33  ;;  %1530 = vmatprep.mubr.f32.mxu1 %v894_v29 }
 0x227   : > { %1531 = vmatmul.mubr.f32.gmra.mrb[4].mxu1 %v895_v31  ;;  %v897_v37 = vmax.f32 %v871_v32, 0.0 }
 0x228   : > { %v896_v35 = vmax.f32 %v866_v34, 0.0  ;;  %v1482_v36 = vpop.f32.mrb[14].mxu0 }
 0x229   : > { %v881_v38 = vadd.f32 %v1482_v36, %v1261_v58  ;;  %v875_v39 = vpop.f32.mrb[15].mxu0 }
 0x22a   : > { %v876_v40 = vadd.f32 %v1261_v58, %v875_v39  ;;  %1533 = vmatprep.mubr.f32.mxu1 %v896_v35 }
 0x22b   : > { %1534 = vmatmul.mubr.f32.gmra.mrb[6].mxu1 %v897_v37  ;;  %v899_v42 = vmax.f32 %v881_v38, 0.0 }
 0x22c   : > { %v898_v41 = vmax.f32 %v876_v40, 0.0 }
 0x22e   : > { %1536 = vmatprep.mubr.f32.mxu1 %v898_v41 }
 0x22f   : > { %1537 = vmatmul.mubr.f32.gmra.mrb[8].mxu1 %v899_v42 }
 0x2e6   : > { %v1517_v43 = vpop.f32.mrb[16].mxu0 }
 0x2e7   : > { %v982_v44 = vpop.f32.mrb[17].mxu0 }
 0x2e8   : > { %v1316_v45 = vpack.c.bf16 %v1517_v43, %v982_v44 }
 0x2ea   : > { %1317 = vst [vmem:[%s1854_s12] sm:$0xff] %v1316_v45   ;;  %v1520_v46 = vpop.f32.mrb[18].mxu0 }
 0x2eb   : > { %v992_v47 = vpop.f32.mrb[19].mxu0 }
 0x2ec   : > { %v1321_v48 = vpack.c.bf16 %v1520_v46, %v992_v47 }
 0x2ee   : > { %1353 = vst [vmem:[%s1854_s12 + $0x8] sm:$0xff] %v1321_v48   ;;  %v1523_v49 = vpop.f32.mrb[20].mxu0 }
 0x2ef   : > { %v1002_v50 = vpop.f32.mrb[21].mxu0 }
 0x2f0   : > { %v1326_v51 = vpack.c.bf16 %v1523_v49, %v1002_v50 }
 0x2f2   : > { %1354 = vst [vmem:[%s1854_s12 + $0x10] sm:$0xff] %v1326_v51   ;;  %v1526_v52 = vpop.f32.mrb[0].mxu1 }
 0x2f3   : > { %v1012_v53 = vpop.f32.mrb[1].mxu1 }
 0x2f4   : > { %v1331_v54 = vpack.c.bf16 %v1526_v52, %v1012_v53 }
 0x2f6   : > { %1355 = vst [vmem:[%s1854_s12 + $0x18] sm:$0xff] %v1331_v54   ;;  %v1529_v55 = vpop.f32.mrb[2].mxu1 }
 0x2f7   : > { %v1022_v56 = vpop.f32.mrb[3].mxu1 }
 0x2f8   : > { %v1336_v57 = vpack.c.bf16 %v1529_v55, %v1022_v56 }
 0x2fa   : > { %1356 = vst [vmem:[%s1854_s12 + $0x20] sm:$0xff] %v1336_v57   ;;  %v1532_v58 = vpop.f32.mrb[4].mxu1 }
 0x2fb   : > { %v1032_v59 = vpop.f32.mrb[5].mxu1 }
 0x2fc   : > { %v1341_v60 = vpack.c.bf16 %v1532_v58, %v1032_v59 }
 0x2fe   : > { %1357 = vst [vmem:[%s1854_s12 + $0x28] sm:$0xff] %v1341_v60   ;;  %v1535_v61 = vpop.f32.mrb[6].mxu1 }
 0x2ff   : > { %v1042_v62 = vpop.f32.mrb[7].mxu1 }
 0x300   : > { %v1346_v63 = vpack.c.bf16 %v1535_v61, %v1042_v62 }
 0x302   : > { %1358 = vst [vmem:[%s1854_s12 + $0x30] sm:$0xff] %v1346_v63   ;;  %v1538_v0 = vpop.f32.mrb[8].mxu1 }
 0x303   : > { %v1052_v1 = vpop.f32.mrb[9].mxu1 }
 0x304   : > { %v1351_v2 = vpack.c.bf16 %v1538_v0, %v1052_v1 }
 0x306   : > { %1359 = vst [vmem:[%s1854_s12 + $0x38] sm:$0xff] %v1351_v2  }
 0x307 PF: > { %s15_s24 = sadd.s32 1, %s1730_s24   ;;  %s2013_s18 = smov %s1710_s19 }
 0x308   : > { %p12_p0 = scmp.ge.s32.totalorder %s15_s24, 6   ;;  %s2014_s19 = smov %s1814_s6 }
 0x309   : > { %s2015_s20 = smov %s1722_s22  ;;  %s2016_s21 = smov %s1726_s23 }
 0x30a   : > { %s2017_s22 = smov %s2020_s25  ;;  %s2018_s23 = smov %s2024_s26 }
 0x30b   :  { %14 = sbr.rel (!%p12_p0) target bundleno = 4 (0x4), region = 127 }

// kernel: gcn_forward.5
= control target key start
LH: loop header
LB: loop body
LE: loop exit
PB: predicated region body
PF: predicated region fallthrough
CT: control target
= control target key end

     0   :  { %s1492_s15 = smov 0   ;;  %s1494_s16 = smov 0   ;;  %s1703_s0 = inlined_call_operand.vmem [shape: bf16[256,256], index: 0, kind: input, shape index: {}]   ;;  %s1704_s1 = inlined_call_operand.vmem [shape: bf16[256,128], index: 1, kind: input, shape index: {}]   ;;  %s1705_s2 = inlined_call_operand.vmem [shape: f32[1,128], index: 2, kind: input, shape index: {}]   ;;  %s1706_s3 = inlined_call_operand.vmem [shape: f32[128,128], index: 3, kind: input, shape index: {}]   ;;  %s1707_s4 = inlined_call_operand.vmem [shape: bf16[256,128], index: 4, kind: output, shape index: {}]  }
   0x1   :  { %s1496_s17 = smov 0   ;;  %s1498_s18 = smov 0  }
   0x2   :  { %s1500_s19 = smov 0   ;;  %s1502_s20 = smov 0  }
   0x3   :  { %s1504_s21 = smov 0  }
   0x4 LB: > { %s23_s22 = sadd.s32 1, %s1456_s19  ;;  %s26_s23 = sadd.s32 1, %s1460_s20  ;;  %s1464_s21 = sphi %s1504_s21, %s14_s21   ;;  %s1460_s20 = sphi %s1502_s20, %s1713_s20   ;;  %s1456_s19 = sphi %s1500_s19, %s1712_s19   ;;  %s1452_s18 = sphi %s1498_s18, %s1711_s18   ;;  %s1448_s17 = sphi %s1496_s17, %s1710_s17   ;;  %s1444_s16 = sphi %s1494_s16, %s1709_s16   ;;  %s1440_s15 = sphi %s1492_s15, %s1708_s15  }
   0x5   : > { %p24_p0 = scmp.ge.s32.totalorder %s23_s22, 2  ;;  %p42_p1 = scmp.ne.s32.totalorder %s1444_s16, %s1440_s15 }
   0x6   : > { %p43_p2 = scmp.eq.s32.totalorder %s1464_s21, 0  ;;  %s35_s27 = sadd.s32 1, %s1444_s16 }
   0x7   : > { %s1715_s22 = smov (%p24_p0, %s23_s22), 0  ;;  %s1717_s23 = smov (!%p24_p0, %s26_s23), %s1460_s20 }
   0x8   : > { %p44_p3 = por %p43_p2, %p42_p1  ;;  %p28_p4 = scmp.ge.s32.totalorder %s1717_s23, 2 }
   0x9   : > { %s31_s24 = ssub.s32 %s1456_s19, %s1715_s22  ;;  %p1025_p6 = scmp.ge.s32.totalorder %s1464_s21, 4 }
   0xa   : > { %s1719_s23 = smov (%p28_p4, %s1717_s23), 0 }
   0xb   : > { %s30_s25 = ssub.s32 %s1460_s20, %s1719_s23  ;;  %168 = sbr.rel (%p1025_p6) target bundleno = 34 (0x22), region = 24 }
   0xc   : > { %s32_s26 = sor.u32 %s31_s24, %s30_s25 }
   0xd   : > { %p33_p5 = scmp.eq.s32.totalorder %s32_s26, 0 }
   0xf   : > { %s1543_s28 = scalar_select %p33_p5, %s1444_s16, %s35_s27  }
  0x12   : > { %171 = sbr.rel (!%p44_p3) target bundleno = 34 (0x22), region = 28  ;;  %s173_s29 = sand.u32 (%p44_p3), 1, %s1444_s16  }
  0x13   : > { %s1073_s30 = sshll.u32 (%p44_p3), %s1460_s20, 5  ;;  %s1026_s5 = sshll.u32 (%p44_p3), %s173_s29, 6 }
  0x14   : > { %s178_s6 = sadd.s32 (%p44_p3), %s1456_s19, %s1073_s30  ;;  %s175_s11 = scalar_lea.vmem (%p44_p3), [#allocation3], %s1026_s5 }
  0x15   : > { %s1029_s7 = sshll.u32 (%p44_p3), %s178_s6, 2 }
  0x16   : > { %s1552_s10 = scalar_lea.vmem (%p44_p3), %s1703_s0, %s1029_s7 }
  0x17   : > { %v196_v0 = vld [vmem:[%s1552_s10] sm:$0xf] (%p44_p3)  ;;  %v198_v1 = vld [vmem:[%s1552_s10 + $0x8] sm:$0xf] (%p44_p3)  ;;  %v200_v2 = vld [vmem:[%s1552_s10 + $0x10] sm:$0xf] (%p44_p3) }
  0x18   : > { %197 = vst [vmem:[%s175_s11] sm:$0xf] (%p44_p3), %v196_v0  ;;  %199 = vst [vmem:[%s175_s11 + $0x4] sm:$0xf] (%p44_p3), %v198_v1  ;;  %v202_v3 = vld [vmem:[%s1552_s10 + $0x18] sm:$0xf] (%p44_p3) }
  0x19   : > { %201 = vst [vmem:[%s175_s11 + $0x8] sm:$0xf] %v200_v2  ;;  %v204_v4 = vld [vmem:[%s1552_s10 + $0x20] sm:$0xf]  ;;  %v206_v5 = vld [vmem:[%s1552_s10 + $0x28] sm:$0xf] }
  0x1a   : > { %203 = vst [vmem:[%s175_s11 + $0xc] sm:$0xf] %v202_v3  ;;  %205 = vst [vmem:[%s175_s11 + $0x10] sm:$0xf] %v204_v4  ;;  %v208_v6 = vld [vmem:[%s1552_s10 + $0x30] sm:$0xf] }
  0x1b   : > { %207 = vst [vmem:[%s175_s11 + $0x14] sm:$0xf] %v206_v5  ;;  %v210_v7 = vld [vmem:[%s1552_s10 + $0x38] sm:$0xf]  ;;  %v212_v8 = vld [vmem:[%s1552_s10 + $0x40] sm:$0xf] }
  0x1c   : > { %209 = vst [vmem:[%s175_s11 + $0x18] sm:$0xf] %v208_v6  ;;  %211 = vst [vmem:[%s175_s11 + $0x1c] sm:$0xf] %v210_v7  ;;  %v214_v9 = vld [vmem:[%s1552_s10 + $0x48] sm:$0xf] }
  0x1d   : > { %213 = vst [vmem:[%s175_s11 + $0x20] sm:$0xf] %v212_v8  ;;  %v216_v10 = vld [vmem:[%s1552_s10 + $0x50] sm:$0xf]  ;;  %v218_v11 = vld [vmem:[%s1552_s10 + $0x58] sm:$0xf] }
  0x1e   : > { %215 = vst [vmem:[%s175_s11 + $0x24] sm:$0xf] %v214_v9  ;;  %217 = vst [vmem:[%s175_s11 + $0x28] sm:$0xf] %v216_v10  ;;  %v220_v12 = vld [vmem:[%s1552_s10 + $0x60] sm:$0xf] }
  0x1f   : > { %219 = vst [vmem:[%s175_s11 + $0x2c] sm:$0xf] %v218_v11  ;;  %v222_v13 = vld [vmem:[%s1552_s10 + $0x68] sm:$0xf]  ;;  %v224_v14 = vld [vmem:[%s1552_s10 + $0x70] sm:$0xf] }
  0x20   : > { %221 = vst [vmem:[%s175_s11 + $0x30] sm:$0xf] %v220_v12  ;;  %223 = vst [vmem:[%s175_s11 + $0x34] sm:$0xf] %v222_v13  ;;  %v226_v15 = vld [vmem:[%s1552_s10 + $0x78] sm:$0xf] }
  0x21   : > { %225 = vst [vmem:[%s175_s11 + $0x38] sm:$0xf] %v224_v14  ;;  %227 = vst [vmem:[%s175_s11 + $0x3c] sm:$0xf] %v226_v15 }
  0x22 PF: > { %p1030_p7 = scmp.ge.s32.totalorder %s1464_s21, 1  ;;  %p290_p8 = scmp.lt.s32.totalorder %s1464_s21, 5 }
  0x24   : > { %p291_p9 = pnand %p1030_p7, %p290_p8 }
  0x25   : > { %s297_s12 = sand.u32 (!%p291_p9), 1, %s1440_s15   ;;  %s1032_s13 = sshll.u32 (!%p291_p9), %s1448_s17, 4 }
  0x26   : > { %294 = sbr.rel (%p291_p9) target bundleno = 551 (0x227), region = 73  ;;  %s1031_s14 = sshll.u32 (!%p291_p9), %s297_s12, 6 }
  0x27   : > { %p329_p10 = scmp.lt.s32.totalorder (!%p291_p9), %s1032_s13, 31  ;;  %s1034_s24 = sshll.u32 (!%p291_p9), %s1452_s18, 4 }
  0x28   : > { %p335_p11 = scmp.lt.s32.totalorder (!%p291_p9), %s1034_s24, 31  ;;  %s1585_s15 = scalar_lea.vmem (!%p291_p9), [#allocation3], %s1031_s14 }
  0x29   : > { %p1036_p12 = scmp.ne.s32.totalorder (!%p291_p9), %s1448_s17, 0 }
  0x2d   : > { %s1721_s13 = smov (!%p329_p10, %s1032_s13), 31  ;;  %s1723_s24 = smov (!%p335_p11, %s1034_s24), 31 }
  0x2e   : > { %s1033_s25 = sshll.u32 %s1721_s13, 2  ;;  %s1035_s30 = sshll.u32 %s1723_s24, 2  ;;  %v1466_v16 = vmov (!%p1036_p12), 0.0  }
  0x2f   : > { %s1578_s29 = scalar_lea.vmem %s1704_s1, %s1033_s25  ;;  %s1583_s7 = scalar_lea.vmem %s1707_s4, %s1035_s30  ;;  %345 = vst [vmem:[#allocation2] sm:$0xff] (!%p1036_p12), %v1466_v16  ;;  %346 = vst [vmem:[#allocation2 + $0x8] sm:$0xff] (!%p1036_p12), %v1466_v16 }
  0x30   : > { %344 = sbr.rel (%p1036_p12) target bundleno = 55 (0x37), region = 81  ;;  %347 = vst [vmem:[#allocation2 + $0x10] sm:$0xff] (!%p1036_p12), %v1466_v16  ;;  %348 = vst [vmem:[#allocation2 + $0x18] sm:$0xff] (!%p1036_p12), %v1466_v16 }
  0x31   : > { %349 = vst [vmem:[#allocation2 + $0x20] sm:$0xff] (!%p1036_p12), %v1466_v16  ;;  %350 = vst [vmem:[#allocation2 + $0x28] sm:$0xff] (!%p1036_p12), %v1466_v16 }
  0x32   : > { %351 = vst [vmem:[#allocation2 + $0x30] sm:$0xff] (!%p1036_p12), %v1466_v16  ;;  %352 = vst [vmem:[#allocation2 + $0x38] sm:$0xff] (!%p1036_p12), %v1466_v16 }
  0x33   : > { %353 = vst [vmem:[#allocation2 + $0x40] sm:$0xff] (!%p1036_p12), %v1466_v16  ;;  %354 = vst [vmem:[#allocation2 + $0x48] sm:$0xff] (!%p1036_p12), %v1466_v16 }
  0x34   : > { %355 = vst [vmem:[#allocation2 + $0x50] sm:$0xff] (!%p1036_p12), %v1466_v16  ;;  %356 = vst [vmem:[#allocation2 + $0x58] sm:$0xff] (!%p1036_p12), %v1466_v16 }
  0x35   : > { %357 = vst [vmem:[#allocation2 + $0x60] sm:$0xff] (!%p1036_p12), %v1466_v16  ;;  %358 = vst [vmem:[#allocation2 + $0x68] sm:$0xff] (!%p1036_p12), %v1466_v16 }
  0x36   : > { %359 = vst [vmem:[#allocation2 + $0x70] sm:$0xff] (!%p1036_p12), %v1466_v16  ;;  %360 = vst [vmem:[#allocation2 + $0x78] sm:$0xff] (!%p1036_p12), %v1466_v16 }
  0x37 PF: > { %v1394_v17 = vld [vmem:[%s1578_s29] sm:$0xff]   ;;  %v1395_v18 = vld [vmem:[%s1578_s29 + $0x8] sm:$0xff]   ;;  %v1396_v19 = vld [vmem:[%s1578_s29 + $0x10] sm:$0xff]   ;;  %p1053_p13 = scmp.ne.s32.totalorder %s1448_s17, 1 }
  0x38   : > { %1185 = vmatprep.subr.bf16.mxu0 %v1394_v17  ;;  %1305 = vmatprep.subr.bf16.mxu1 %v1394_v17  ;;  %v1397_v20 = vld [vmem:[%s1578_s29 + $0x18] sm:$0xff]   ;;  %v1402_v21 = vld [vmem:[%s1585_s15] sm:$0xff]   ;;  %v1399_v24 = vld [vmem:[%s1578_s29 + $0x28] sm:$0xff]  }
  0x39   : > { %1186 = vmatpush3.bf16.msra.mxu0 %v1394_v17  ;;  %1313 = vmatpush3.bf16.msra.mxu1 %v1394_v17  ;;  %v1403_v22 = vld [vmem:[%s1585_s15 + $0x20] sm:$0xff]   ;;  %v1400_v25 = vld [vmem:[%s1578_s29 + $0x30] sm:$0xff]   ;;  %v1401_v26 = vld [vmem:[%s1578_s29 + $0x38] sm:$0xff]  }
  0x3a   : > { %1187 = vmatprep.subr.bf16.mxu0 %v1395_v18  ;;  %1306 = vmatprep.subr.bf16.mxu1 %v1395_v18  ;;  %v1398_v23 = vld [vmem:[%s1578_s29 + $0x20] sm:$0xff]   ;;  %v1404_v27 = vld [vmem:[%s1585_s15 + $0x8] sm:$0xff]   ;;  %v1406_v29 = vld [vmem:[%s1585_s15 + $0x10] sm:$0xff]  }
  0x3b   : > { %1201 = vmatprep.mubr.bf16.mxu0 %v1402_v21  ;;  %1209 = vmatprep.mubr.bf16.mxu1 %v1403_v22  ;;  %v1405_v28 = vld [vmem:[%s1585_s15 + $0x28] sm:$0xff]   ;;  %v1407_v30 = vld [vmem:[%s1585_s15 + $0x30] sm:$0xff]   ;;  %v1408_v31 = vld [vmem:[%s1585_s15 + $0x18] sm:$0xff]  }
  0x3c   : > { %v1409_v32 = vld [vmem:[%s1585_s15 + $0x38] sm:$0xff]   ;;  %v363_v33 = vld [vmem:[#allocation2 + $0x10] sm:$0xff]  ;;  %v361_v35 = vld [vmem:[#allocation2] sm:$0xff] }
  0x3d   : > { %1188 = vmatpush3.bf16.msra.mxu0 %v1395_v18  ;;  %1314 = vmatpush3.bf16.msra.mxu1 %v1395_v18  ;;  %v371_v34 = vld [vmem:[#allocation2 + $0x50] sm:$0xff]  ;;  %v369_v36 = vld [vmem:[#allocation2 + $0x40] sm:$0xff]  ;;  %v364_v39 = vld [vmem:[#allocation2 + $0x18] sm:$0xff] }
  0x3e   : > { %1189 = vmatprep.subr.bf16.mxu0 %v1396_v19  ;;  %1307 = vmatprep.subr.bf16.mxu1 %v1396_v19  ;;  %v372_v40 = vld [vmem:[#allocation2 + $0x58] sm:$0xff]  ;;  %v362_v45 = vld [vmem:[#allocation2 + $0x8] sm:$0xff]  ;;  %v367_v57 = vld [vmem:[#allocation2 + $0x30] sm:$0xff] }
  0x3f   : > { %v370_v46 = vld [vmem:[#allocation2 + $0x48] sm:$0xff]  ;;  %v375_v58 = vld [vmem:[#allocation2 + $0x70] sm:$0xff]  ;;  %v365_v59 = vld [vmem:[#allocation2 + $0x20] sm:$0xff] }
  0x40   : > { %v373_v60 = vld [vmem:[#allocation2 + $0x60] sm:$0xff]  ;;  %v368_v63 = vld [vmem:[#allocation2 + $0x38] sm:$0xff]  ;;  %v366_v5 = vld [vmem:[#allocation2 + $0x28] sm:$0xff] }
  0x41   : > { %1190 = vmatpush3.bf16.msra.mxu0 %v1396_v19  ;;  %1315 = vmatpush3.bf16.msra.mxu1 %v1396_v19  ;;  %v376_v0 = vld [vmem:[#allocation2 + $0x78] sm:$0xff]  ;;  %v374_v6 = vld [vmem:[#allocation2 + $0x68] sm:$0xff]  ;;  %v693_v17 = vld [vmem:[%s1706_s3] sm:$0xff] (!%p1053_p13) }
  0x42   : > { %1191 = vmatprep.subr.bf16.mxu0 %v1397_v20  ;;  %1308 = vmatprep.subr.bf16.mxu1 %v1397_v20  ;;  %v694_v18 = vld [vmem:[%s1706_s3 + $0x8] sm:$0xff] (!%p1053_p13)  ;;  %v695_v19 = vld [vmem:[%s1706_s3 + $0x10] sm:$0xff] (!%p1053_p13)  ;;  %v696_v21 = vld [vmem:[%s1706_s3 + $0x18] sm:$0xff] (!%p1053_p13) }
  0x43   : > { %v1277_v22 = vpack.c.bf16 (!%p1053_p13), %v696_v21, %v695_v19 }
  0x45   : > { %1192 = vmatpush3.bf16.msra.mxu0 %v1397_v20  ;;  %1316 = vmatpush3.bf16.msra.mxu1 %v1397_v20  ;;  %v1273_v20 = vpack.c.bf16 (!%p1053_p13), %v694_v18, %v693_v17 }
  0x46   : > { %1193 = vmatprep.subr.bf16.mxu0 %v1398_v23  ;;  %1309 = vmatprep.subr.bf16.mxu1 %v1398_v23 }
  0x49   : > { %1194 = vmatpush3.bf16.msra.mxu0 %v1398_v23  ;;  %1317 = vmatpush3.bf16.msra.mxu1 %v1398_v23  ;;  %v697_v23 = vld [vmem:[%s1706_s3 + $0x20] sm:$0xff] (!%p1053_p13) }
  0x4a   : > { %1195 = vmatprep.subr.bf16.mxu0 %v1399_v24  ;;  %1310 = vmatprep.subr.bf16.mxu1 %v1399_v24 }
  0x4d   : > { %1196 = vmatpush3.bf16.msra.mxu0 %v1399_v24  ;;  %1318 = vmatpush3.bf16.msra.mxu1 %v1399_v24  ;;  %v698_v24 = vld [vmem:[%s1706_s3 + $0x28] sm:$0xff] (!%p1053_p13) }
  0x4e   : > { %1197 = vmatprep.subr.bf16.mxu0 %v1400_v25  ;;  %1311 = vmatprep.subr.bf16.mxu1 %v1400_v25 }
  0x51   : > { %1198 = vmatpush3.bf16.msra.mxu0 %v1400_v25  ;;  %1319 = vmatpush3.bf16.msra.mxu1 %v1400_v25  ;;  %v1281_v25 = vpack.c.bf16 (!%p1053_p13), %v698_v24, %v697_v23 }
  0x52   : > { %1199 = vmatprep.subr.bf16.mxu0 %v1401_v26  ;;  %1312 = vmatprep.subr.bf16.mxu1 %v1401_v26 }
  0x55   : > { %1200 = vmatpush3.bf16.msra.mxu0 %v1401_v26  ;;  %1320 = vmatpush3.bf16.msra.mxu1 %v1401_v26 }
  0x56   : > { %1274 = vmatprep.subr.bf16.mxu0 (!%p1053_p13), %v1273_v20  ;;  %1321 = vmatprep.subr.bf16.mxu1 (!%p1053_p13), %v1273_v20 }
  0x58   : > { %1202 = vmatmul.mubr.bf16.vlgmr.msra.gmra.mrb[0].mxu0 %v1404_v27  ;;  %1210 = vmatmul.mubr.bf16.vlgmr.msra.gmra.mrb[0].mxu1 %v1405_v28  ;;  %v1626_v27 = vld [vmem:[%s1705_s2] ss:$0 sm:$0xff] (!%p1053_p13)  ;;  %v699_v28 = vld [vmem:[%s1706_s3 + $0x30] sm:$0xff] (!%p1053_p13) }
  0x59   : > { %1205 = vmatprep.mubr.bf16.mxu0 %v1406_v29  ;;  %1213 = vmatprep.mubr.bf16.mxu1 %v1407_v30  ;;  %v700_v29 = vld [vmem:[%s1706_s3 + $0x38] sm:$0xff] (!%p1053_p13) }
  0x5a   : > { %1276 = vmatpush3.bf16.msra.mxu0 (!%p1053_p13), %v1273_v20  ;;  %1329 = vmatpush3.bf16.msra.mxu1 (!%p1053_p13), %v1273_v20 }
  0x5b   : > { %1278 = vmatprep.subr.bf16.mxu0 (!%p1053_p13), %v1277_v22  ;;  %1322 = vmatprep.subr.bf16.mxu1 (!%p1053_p13), %v1277_v22 }
  0x5e   : > { %1280 = vmatpush3.bf16.msra.mxu0 (!%p1053_p13), %v1277_v22  ;;  %1330 = vmatpush3.bf16.msra.mxu1 (!%p1053_p13), %v1277_v22 }
  0x5f   : > { %1282 = vmatprep.subr.bf16.mxu0 (!%p1053_p13), %v1281_v25  ;;  %1323 = vmatprep.subr.bf16.mxu1 (!%p1053_p13), %v1281_v25 }
  0x60   : > { %1206 = vmatmul.mubr.bf16.gmra.mrb[4].mxu0 %v1408_v31  ;;  %1214 = vmatmul.mubr.bf16.gmra.mrb[4].mxu1 %v1409_v32 }
  0x62   : > { %1284 = vmatpush3.bf16.msra.mxu0 (!%p1053_p13), %v1281_v25  ;;  %1331 = vmatpush3.bf16.msra.mxu1 (!%p1053_p13), %v1281_v25 }
 0x12b   : > { %v1203_v37 = vpop.f32.mrb[0].mxu0  ;;  %v1211_v38 = vpop.f32.mrb[0].mxu1 }
 0x12c   : > { %v604_v41 = vadd.f32 %v1203_v37, %v363_v33  ;;  %v612_v42 = vadd.f32 %v1211_v38, %v371_v34  ;;  %v539_v43 = vpop.f32.mrb[1].mxu0  ;;  %v571_v44 = vpop.f32.mrb[1].mxu1  ;;  %v1285_v34 = vpack.c.bf16 (!%p1053_p13), %v700_v29, %v699_v28  ;;  %v702_v37 = vld [vmem:[%s1706_s3 + $0x48] sm:$0xff] (!%p1053_p13) }
 0x12d   : > { %v602_v47 = vadd.f32 %v539_v43, %v361_v35  ;;  %v610_v48 = vadd.f32 %v571_v44, %v369_v36  ;;  %v1204_v49 = vpop.f32.mrb[2].mxu0  ;;  %v1212_v50 = vpop.f32.mrb[2].mxu1  ;;  %v701_v36 = vld [vmem:[%s1706_s3 + $0x40] sm:$0xff] (!%p1053_p13)  ;;  %v706_v43 = vld [vmem:[%s1706_s3 + $0x68] sm:$0xff] (!%p1053_p13) }
 0x12e   : > { %620 = vst [vmem:[#allocation2 + $0x10] sm:$0xff] %v604_v41  ;;  %628 = vst [vmem:[#allocation2 + $0x50] sm:$0xff] %v612_v42  ;;  %v605_v51 = vadd.f32 %v1204_v49, %v364_v39  ;;  %v613_v52 = vadd.f32 %v1212_v50, %v372_v40  ;;  %v542_v53 = vpop.f32.mrb[3].mxu0  ;;  %v574_v54 = vpop.f32.mrb[3].mxu1  ;;  %1286 = vmatprep.subr.bf16.mxu0 (!%p1053_p13), %v1285_v34  ;;  %1324 = vmatprep.subr.bf16.mxu1 (!%p1053_p13), %v1285_v34  ;;  %v703_v39 = vld [vmem:[%s1706_s3 + $0x50] sm:$0xff] (!%p1053_p13)  ;;  %v704_v40 = vld [vmem:[%s1706_s3 + $0x58] sm:$0xff] (!%p1053_p13) }
 0x12f   : > { %618 = vst [vmem:[#allocation2] sm:$0xff] %v602_v47  ;;  %626 = vst [vmem:[#allocation2 + $0x40] sm:$0xff] %v610_v48  ;;  %v603_v55 = vadd.f32 %v542_v53, %v362_v45  ;;  %v611_v56 = vadd.f32 %v574_v54, %v370_v46  ;;  %v1289_v38 = vpack.c.bf16 (!%p1053_p13), %v702_v37, %v701_v36  ;;  %1288 = vmatpush3.bf16.msra.mxu0 (!%p1053_p13), %v1285_v34  ;;  %v705_v42 = vld [vmem:[%s1706_s3 + $0x60] sm:$0xff] (!%p1053_p13)  ;;  %v707_v45 = vld [vmem:[%s1706_s3 + $0x70] sm:$0xff] (!%p1053_p13) }
 0x130   : > { %621 = vst [vmem:[#allocation2 + $0x18] sm:$0xff] %v605_v51  ;;  %629 = vst [vmem:[#allocation2 + $0x58] sm:$0xff] %v613_v52  ;;  %1332 = vmatpush3.bf16.msra.mxu1 (!%p1053_p13), %v1285_v34  ;;  %v1293_v41 = vpack.c.bf16 (!%p1053_p13), %v704_v40, %v703_v39  ;;  %v1297_v44 = vpack.c.bf16 (!%p1053_p13), %v706_v43, %v705_v42  ;;  %v708_v46 = vld [vmem:[%s1706_s3 + $0x78] sm:$0xff] (!%p1053_p13) }
 0x131   : > { %619 = vst [vmem:[#allocation2 + $0x8] sm:$0xff] %v603_v55  ;;  %627 = vst [vmem:[#allocation2 + $0x48] sm:$0xff] %v611_v56  ;;  %1290 = vmatprep.subr.bf16.mxu0 (!%p1053_p13), %v1289_v38  ;;  %1325 = vmatprep.subr.bf16.mxu1 (!%p1053_p13), %v1289_v38  ;;  %v1301_v49 = vpack.c.bf16 (!%p1053_p13), %v708_v46, %v707_v45 }
 0x133   : > { %v1207_v61 = vpop.f32.mrb[4].mxu0  ;;  %v1215_v62 = vpop.f32.mrb[4].mxu1  ;;  %637 = sbr.rel (%p1053_p13) target bundleno = 551 (0x227), region = 85  ;;  %1292 = vmatpush3.bf16.msra.mxu0 (!%p1053_p13), %v1289_v38 }
 0x134   : > { %v608_v1 = vadd.f32 %v1207_v61, %v367_v57  ;;  %v616_v2 = vadd.f32 %v1215_v62, %v375_v58  ;;  %v555_v3 = vpop.f32.mrb[5].mxu0  ;;  %v587_v4 = vpop.f32.mrb[5].mxu1  ;;  %1333 = vmatpush3.bf16.msra.mxu1 (!%p1053_p13), %v1289_v38  ;;  %1294 = vmatprep.subr.bf16.mxu0 (!%p1053_p13), %v1293_v41 }
 0x135   : > { %v606_v7 = vadd.f32 %v555_v3, %v365_v59  ;;  %v614_v8 = vadd.f32 %v587_v4, %v373_v60  ;;  %v1208_v9 = vpop.f32.mrb[6].mxu0  ;;  %v1216_v10 = vpop.f32.mrb[6].mxu1  ;;  %1326 = vmatprep.subr.bf16.mxu1 (!%p1053_p13), %v1293_v41  ;;  %v640_v50 = vld [vmem:[#allocation2 + $0x10] sm:$0xff] (!%p1053_p13) }
 0x136   : > { %624 = vst [vmem:[#allocation2 + $0x30] sm:$0xff] %v608_v1  ;;  %632 = vst [vmem:[#allocation2 + $0x70] sm:$0xff] %v616_v2  ;;  %v609_v11 = vadd.f32 %v1208_v9, %v368_v63  ;;  %v617_v12 = vadd.f32 %v1216_v10, %v376_v0  ;;  %v558_v13 = vpop.f32.mrb[7].mxu0  ;;  %v590_v14 = vpop.f32.mrb[7].mxu1  ;;  %v638_v26 = vld [vmem:[#allocation2] sm:$0xff] (!%p1053_p13)  ;;  %v648_v51 = vld [vmem:[#allocation2 + $0x50] sm:$0xff] (!%p1053_p13)  ;;  %v663_v54 = vadd.f32 (!%p1053_p13), %v1626_v27, %v640_v50 }
 0x137   : > { %622 = vst [vmem:[#allocation2 + $0x20] sm:$0xff] %v606_v7  ;;  %630 = vst [vmem:[#allocation2 + $0x60] sm:$0xff] %v614_v8  ;;  %v607_v15 = vadd.f32 %v558_v13, %v366_v5  ;;  %v615_v16 = vadd.f32 %v590_v14, %v374_v6  ;;  %v661_v30 = vadd.f32 (!%p1053_p13), %v1626_v27, %v638_v26  ;;  %v646_v31 = vld [vmem:[#allocation2 + $0x40] sm:$0xff] (!%p1053_p13)  ;;  %1296 = vmatpush3.bf16.msra.mxu0 (!%p1053_p13), %v1293_v41  ;;  %v641_v56 = vld [vmem:[#allocation2 + $0x18] sm:$0xff] (!%p1053_p13) }
 0x138   : > { %625 = vst [vmem:[#allocation2 + $0x38] sm:$0xff] %v609_v11  ;;  %633 = vst [vmem:[#allocation2 + $0x78] sm:$0xff] %v617_v12  ;;  %v669_v32 = vadd.f32 (!%p1053_p13), %v1626_v27, %v646_v31  ;;  %1334 = vmatpush3.bf16.msra.mxu1 (!%p1053_p13), %v1293_v41  ;;  %v639_v47 = vld [vmem:[#allocation2 + $0x8] sm:$0xff] (!%p1053_p13)  ;;  %1298 = vmatprep.subr.bf16.mxu0 (!%p1053_p13), %v1297_v44  ;;  %v671_v55 = vadd.f32 (!%p1053_p13), %v1626_v27, %v648_v51  ;;  %v649_v57 = vld [vmem:[#allocation2 + $0x58] sm:$0xff] (!%p1053_p13)  ;;  %v679_v0 = vmax.f32 (!%p1053_p13), %v663_v54, 0.0 }
 0x139   : > { %623 = vst [vmem:[#allocation2 + $0x28] sm:$0xff] %v607_v15  ;;  %631 = vst [vmem:[#allocation2 + $0x68] sm:$0xff] %v615_v16  ;;  %v677_v33 = vmax.f32 (!%p1053_p13), %v661_v30, 0.0  ;;  %v647_v48 = vld [vmem:[#allocation2 + $0x48] sm:$0xff] (!%p1053_p13)  ;;  %1327 = vmatprep.subr.bf16.mxu1 (!%p1053_p13), %v1297_v44  ;;  %v662_v52 = vadd.f32 (!%p1053_p13), %v1626_v27, %v639_v47  ;;  %v664_v62 = vadd.f32 (!%p1053_p13), %v1626_v27, %v641_v56 }
 0x13a   : > { %v685_v35 = vmax.f32 %v669_v32, 0.0  ;;  %v670_v53 = vadd.f32 %v1626_v27, %v647_v48  ;;  %v672_v63 = vadd.f32 %v1626_v27, %v649_v57  ;;  %v687_v1 = vmax.f32 %v671_v55, 0.0 }
 0x13b   : > { %1249 = vmatprep.mubr.f32.mxu0 %v677_v33  ;;  %1300 = vmatpush3.bf16.msra.mxu0 %v1297_v44  ;;  %v678_v60 = vmax.f32 %v662_v52, 0.0  ;;  %v680_v8 = vmax.f32 %v664_v62, 0.0 }
 0x13c   : > { %1261 = vmatprep.mubr.f32.mxu1 %v685_v35  ;;  %1335 = vmatpush3.bf16.msra.mxu1 %v1297_v44  ;;  %v686_v61 = vmax.f32 %v670_v53, 0.0  ;;  %v688_v9 = vmax.f32 %v672_v63, 0.0 }
 0x13d   : > { %1302 = vmatprep.subr.bf16.mxu0 %v1301_v49  ;;  %1328 = vmatprep.subr.bf16.mxu1 %v1301_v49  ;;  %v644_v6 = vld [vmem:[#allocation2 + $0x30] sm:$0xff] }
 0x13e   : > { %v642_v58 = vld [vmem:[#allocation2 + $0x20] sm:$0xff]  ;;  %v652_v7 = vld [vmem:[#allocation2 + $0x70] sm:$0xff]  ;;  %v667_v14 = vadd.f32 %v1626_v27, %v644_v6 }
 0x13f   : > { %v650_v59 = vld [vmem:[#allocation2 + $0x60] sm:$0xff]  ;;  %1304 = vmatpush3.bf16.msra.mxu0 %v1301_v49  ;;  %v665_v2 = vadd.f32 %v1626_v27, %v642_v58  ;;  %v675_v15 = vadd.f32 %v1626_v27, %v652_v7  ;;  %v645_v16 = vld [vmem:[#allocation2 + $0x38] sm:$0xff] }
 0x140   : > { %1336 = vmatpush3.bf16.msra.mxu1 %v1301_v49  ;;  %v673_v3 = vadd.f32 %v1626_v27, %v650_v59  ;;  %v643_v4 = vld [vmem:[#allocation2 + $0x28] sm:$0xff]  ;;  %v653_v17 = vld [vmem:[#allocation2 + $0x78] sm:$0xff]  ;;  %v668_v20 = vadd.f32 %v1626_v27, %v645_v16  ;;  %v683_v22 = vmax.f32 %v667_v14, 0.0 }
 0x141   : > { %v651_v5 = vld [vmem:[#allocation2 + $0x68] sm:$0xff]  ;;  %v666_v10 = vadd.f32 %v1626_v27, %v643_v4  ;;  %v681_v12 = vmax.f32 %v665_v2, 0.0  ;;  %v676_v21 = vadd.f32 %v1626_v27, %v653_v17  ;;  %v691_v23 = vmax.f32 %v675_v15, 0.0 }
 0x142   : > { %1250 = vmatmul.mubr.f32.vlgmr.msra.gmra.mrb[0].mxu0 %v678_v60  ;;  %v674_v11 = vadd.f32 %v1626_v27, %v651_v5  ;;  %v689_v13 = vmax.f32 %v673_v3, 0.0  ;;  %v684_v24 = vmax.f32 %v668_v20, 0.0 }
 0x143   : > { %1262 = vmatmul.mubr.f32.vlgmr.msra.gmra.mrb[0].mxu1 %v686_v61  ;;  %1252 = vmatprep.mubr.f32.mxu0 %v679_v0  ;;  %v682_v18 = vmax.f32 %v666_v10, 0.0  ;;  %v692_v25 = vmax.f32 %v676_v21, 0.0 }
 0x144   : > { %1264 = vmatprep.mubr.f32.mxu1 %v687_v1  ;;  %v690_v19 = vmax.f32 %v674_v11, 0.0 }
 0x146   : > { %1253 = vmatmul.mubr.f32.gmra.mrb[2].mxu0 %v680_v8 }
 0x147   : > { %1265 = vmatmul.mubr.f32.gmra.mrb[2].mxu1 %v688_v9  ;;  %1255 = vmatprep.mubr.f32.mxu0 %v681_v12 }
 0x148   : > { %1267 = vmatprep.mubr.f32.mxu1 %v689_v13 }
 0x14a   : > { %1256 = vmatmul.mubr.f32.gmra.mrb[4].mxu0 %v682_v18 }
 0x14b   : > { %1268 = vmatmul.mubr.f32.gmra.mrb[4].mxu1 %v690_v19  ;;  %1258 = vmatprep.mubr.f32.mxu0 %v683_v22 }
 0x14c   : > { %1270 = vmatprep.mubr.f32.mxu1 %v691_v23 }
 0x14e   : > { %1259 = vmatmul.mubr.f32.gmra.mrb[6].mxu0 %v684_v24 }
 0x14f   : > { %1271 = vmatmul.mubr.f32.gmra.mrb[6].mxu1 %v692_v25 }
 0x215   : > { %v1251_v26 = vpop.f32.mrb[0].mxu0 }
 0x216   : > { %v1263_v28 = vpop.f32.mrb[0].mxu1  ;;  %v775_v29 = vpop.f32.mrb[1].mxu0 }
 0x217   : > { %v815_v27 = vpop.f32.mrb[1].mxu1  ;;  %v1093_v30 = vpack.c.bf16 %v1251_v26, %v775_v29 }
 0x218   : > { %v1113_v31 = vpack.c.bf16 %v1263_v28, %v815_v27 }
 0x219   : > { %1094 = vst [vmem:[%s1583_s7] sm:$0xff] %v1093_v30   ;;  %v1254_v32 = vpop.f32.mrb[2].mxu0 }
 0x21a   : > { %1133 = vst [vmem:[%s1583_s7 + $0x20] sm:$0xff] %v1113_v31   ;;  %v1266_v33 = vpop.f32.mrb[2].mxu1  ;;  %v785_v34 = vpop.f32.mrb[3].mxu0 }
 0x21b   : > { %v825_v35 = vpop.f32.mrb[3].mxu1  ;;  %v1098_v36 = vpack.c.bf16 %v1254_v32, %v785_v34 }
 0x21c   : > { %v1118_v37 = vpack.c.bf16 %v1266_v33, %v825_v35 }
 0x21d   : > { %1130 = vst [vmem:[%s1583_s7 + $0x8] sm:$0xff] %v1098_v36   ;;  %v1257_v38 = vpop.f32.mrb[4].mxu0 }
 0x21e   : > { %1134 = vst [vmem:[%s1583_s7 + $0x28] sm:$0xff] %v1118_v37   ;;  %v1269_v39 = vpop.f32.mrb[4].mxu1  ;;  %v795_v40 = vpop.f32.mrb[5].mxu0 }
 0x21f   : > { %v835_v41 = vpop.f32.mrb[5].mxu1  ;;  %v1103_v42 = vpack.c.bf16 %v1257_v38, %v795_v40 }
 0x220   : > { %v1123_v43 = vpack.c.bf16 %v1269_v39, %v835_v41 }
 0x221   : > { %1131 = vst [vmem:[%s1583_s7 + $0x10] sm:$0xff] %v1103_v42   ;;  %v1260_v44 = vpop.f32.mrb[6].mxu0 }
 0x222   : > { %1135 = vst [vmem:[%s1583_s7 + $0x30] sm:$0xff] %v1123_v43   ;;  %v1272_v45 = vpop.f32.mrb[6].mxu1  ;;  %v805_v46 = vpop.f32.mrb[7].mxu0 }
 0x223   : > { %v845_v47 = vpop.f32.mrb[7].mxu1  ;;  %v1108_v48 = vpack.c.bf16 %v1260_v44, %v805_v46 }
 0x224   : > { %v1128_v49 = vpack.c.bf16 %v1272_v45, %v845_v47 }
 0x225   : > { %1132 = vst [vmem:[%s1583_s7 + $0x18] sm:$0xff] %v1108_v48  }
 0x226   : > { %1136 = vst [vmem:[%s1583_s7 + $0x38] sm:$0xff] %v1128_v49  }
 0x227 PF: > { %s14_s21 = sadd.s32 1, %s1464_s21   ;;  %s1708_s15 = smov %s1444_s16 }
 0x228   : > { %p11_p0 = scmp.ge.s32.totalorder %s14_s21, 6   ;;  %s1709_s16 = smov %s1543_s28 }
 0x229   : > { %s1710_s17 = smov %s1456_s19  ;;  %s1711_s18 = smov %s1460_s20 }
 0x22a   : > { %s1712_s19 = smov %s1715_s22  ;;  %s1713_s20 = smov %s1719_s23 }
 0x22b   :  { %13 = sbr.rel (!%p11_p0) target bundleno = 4 (0x4), region = 123 }

// kernel: gcn_forward.7
= control target key start
LH: loop header
LB: loop body
LE: loop exit
PB: predicated region body
PF: predicated region fallthrough
CT: control target
= control target key end

     0   :  { %9 = vsyncpa [#allocation4], 0  ;;  %s886_s15 = smov 0   ;;  %s1045_s0 = inlined_call_operand.vmem [shape: f32[256,128], index: 0, kind: input, shape index: {}]   ;;  %s1046_s1 = inlined_call_operand.vmem [shape: f32[2,256], index: 1, kind: input, shape index: {}]   ;;  %s1047_s2 = inlined_call_operand.vmem [shape: f32[128,4], index: 2, kind: input, shape index: {}]   ;;  %s1048_s3 = inlined_call_operand.vmem [shape: f32[1,4], index: 3, kind: input, shape index: {}]   ;;  %s1049_s4 = inlined_call_operand.hbm [shape: f32[2,4], index: 4, kind: output, shape index: {}]  }
   0x1 LB: > { %s892_s16 = sadd.s32 4294967295, %s854_s15   ;;  %p708_p0 = scmp.ge.s32.totalorder %s854_s15, 1  ;;  %s854_s15 = sphi %s886_s15, %s15_s15  }
   0x2   : > { %p168_p1 = scmp.lt.s32.totalorder %s854_s15, 3 }
   0x4   : > { %p169_p2 = pnand %p708_p0, %p168_p1 }
   0x5   : > { %s709_s17 = sshll.u32 (!%p169_p2), %s892_s16, 4  ;;  %p199_p3 = scmp.lt.s32.totalorder (!%p169_p2), %s892_s16, 1 }
   0x6   : > { %172 = sbr.rel (%p169_p2) target bundleno = 790 (0x316), region = 36  ;;  %p194_p4 = scmp.lt.s32.totalorder (!%p169_p2), %s709_s17, 31 }
   0x7   : > { %p712_p5 = scmp.ne.s32.totalorder (!%p169_p2), %s892_s16, 0 }
   0xd   : > { %s200_s18 = scalar_select %p199_p3, %s892_s16, 1 }
   0xe   : > { %s1051_s17 = smov (!%p194_p4, %s709_s17), 31  ;;  %206 = sbr.rel (%p712_p5) target bundleno = 21 (0x15), region = 40 }
   0xf   : > { %s711_s19 = sshll.u32 %s200_s18, 1  ;;  %s710_s20 = sshll.u32 %s1051_s17, 3  ;;  %v856_v0 = vmov (!%p712_p5), -1e+30  }
  0x10   : > { %s202_s23 = scalar_lea.vmem %s1046_s1, %s711_s19  ;;  %s905_s26 = scalar_lea.vmem %s1045_s0, %s710_s20  ;;  %207 = vst [vmem:[#allocation2] sm:$0x3] (!%p712_p5), %v856_v0 }
  0x15 PF: > { %v225_v1 = vlaneseq  ;;  %v224_v3 = vld [vmem:[%s202_s23] sm:$0x3]  ;;  %v210_v28 = vld [vmem:[%s905_s26 + $0x10] sm:$0xff]  ;;  %v213_v29 = vld [vmem:[%s905_s26 + $0x28] sm:$0xff]  ;;  %p713_p6 = scmp.ne.s32.totalorder %s892_s16, 1 }
  0x16   : > { %v208_v30 = vld [vmem:[%s905_s26] sm:$0xff]  ;;  %v211_v31 = vld [vmem:[%s905_s26 + $0x18] sm:$0xff]  ;;  %v209_v32 = vld [vmem:[%s905_s26 + $0x8] sm:$0xff] }
  0x17   : > { %v226_v2 = vshrl.u32 %v225_v1, 7  ;;  %v212_v33 = vld [vmem:[%s905_s26 + $0x20] sm:$0xff]  ;;  %v215_v34 = vld [vmem:[%s905_s26 + $0x38] sm:$0xff]  ;;  %v922_v37 = vld [vmem:[%s905_s26 + $0x30] sm:$0xff] }
  0x18   : > { %v217_v44 = vld [vmem:[%s905_s26 + $0x48] sm:$0xff]  ;;  %v216_v47 = vld [vmem:[%s905_s26 + $0x40] sm:$0xff]  ;;  %v219_v48 = vld [vmem:[%s905_s26 + $0x58] sm:$0xff] }
  0x19   : > { %v227_v4 = vsub.s32 0, %v226_v2  ;;  %v382_v6 = vsub.s32 1, %v226_v2  ;;  %v218_v54 = vld [vmem:[%s905_s26 + $0x50] sm:$0xff]  ;;  %v221_v58 = vld [vmem:[%s905_s26 + $0x68] sm:$0xff]  ;;  %v220_v62 = vld [vmem:[%s905_s26 + $0x60] sm:$0xff] }
  0x1b   : > { %v228_v5 = vrot.slane %v224_v3, %v227_v4  ;;  %v383_v7 = vrot.slane %v224_v3, %v382_v6 }
  0x1d   : > { %238 = vbcast.lane.b32.xlu1 %v228_v5, 272  ;;  %230 = vbcast.lane.b32.xlu0 %v228_v5, 256 }
  0x21   : > { %242 = vbcast.lane.b32.xlu1 %v228_v5, 280  ;;  %234 = vbcast.lane.b32.xlu0 %v228_v5, 264 }
  0x25   : > { %250 = vbcast.lane.b32.xlu1 %v228_v5, 296  ;;  %246 = vbcast.lane.b32.xlu0 %v228_v5, 288 }
  0x29   : > { %258 = vbcast.lane.b32.xlu1 %v228_v5, 312  ;;  %254 = vbcast.lane.b32.xlu0 %v228_v5, 304 }
  0x2d   : > { %389 = vbcast.lane.b32.xlu1 %v383_v7, 264  ;;  %385 = vbcast.lane.b32.xlu0 %v383_v7, 256 }
  0x31   : > { %397 = vbcast.lane.b32.xlu1 %v383_v7, 280  ;;  %393 = vbcast.lane.b32.xlu0 %v383_v7, 272 }
  0x35   : > { %405 = vbcast.lane.b32.xlu1 %v383_v7, 296  ;;  %401 = vbcast.lane.b32.xlu0 %v383_v7, 288 }
  0x39   : > { %413 = vbcast.lane.b32.xlu1 %v383_v7, 312  ;;  %409 = vbcast.lane.b32.xlu0 %v383_v7, 304 }
  0x3d   : > { %266 = vbcast.lane.b32.xlu1 %v228_v5, 328  ;;  %262 = vbcast.lane.b32.xlu0 %v228_v5, 320 }
  0x41   : > { %274 = vbcast.lane.b32.xlu1 %v228_v5, 344  ;;  %270 = vbcast.lane.b32.xlu0 %v228_v5, 336 }
  0x45   : > { %421 = vbcast.lane.b32.xlu1 %v383_v7, 328  ;;  %417 = vbcast.lane.b32.xlu0 %v383_v7, 320 }
  0x49   : > { %429 = vbcast.lane.b32.xlu1 %v383_v7, 344  ;;  %425 = vbcast.lane.b32.xlu0 %v383_v7, 336 }
  0x4d   : > { %282 = vbcast.lane.b32.xlu1 %v228_v5, 360  ;;  %278 = vbcast.lane.b32.xlu0 %v228_v5, 352 }
  0x51   : > { %290 = vbcast.lane.b32.xlu1 %v228_v5, 376  ;;  %286 = vbcast.lane.b32.xlu0 %v228_v5, 368 }
  0x55   : > { %437 = vbcast.lane.b32.xlu1 %v383_v7, 360  ;;  %433 = vbcast.lane.b32.xlu0 %v383_v7, 352 }
  0x59   : > { %445 = vbcast.lane.b32.xlu1 %v383_v7, 376  ;;  %441 = vbcast.lane.b32.xlu0 %v383_v7, 368 }
  0x8f   : > { %v239_v8 = vpop.permute.xlu1 %238  ;;  %v231_v9 = vpop.permute.xlu0 %230 }
  0x90   : > { %vm294_vm0 = vcmp.gt.f32.partialorder %v239_v8, 0.5  ;;  %vm292_vm2 = vcmp.gt.f32.partialorder %v231_v9, 0.5 }
  0x91   : > { %v342_v35 = vsel %vm294_vm0, %v210_v28, -1e+30  ;;  %v340_v40 = vsel %vm292_vm2, %v208_v30, -1e+30 }
  0x93   : > { %v243_v10 = vpop.permute.xlu1 %242  ;;  %v235_v11 = vpop.permute.xlu0 %234 }
  0x94   : > { %vm295_vm3 = vcmp.gt.f32.partialorder %v243_v10, 0.5  ;;  %vm293_vm4 = vcmp.gt.f32.partialorder %v235_v11, 0.5 }
  0x95   : > { %v343_v41 = vsel %vm295_vm3, %v211_v31, -1e+30  ;;  %v341_v42 = vsel %vm293_vm4, %v209_v32, -1e+30 }
  0x97   : > { %v251_v12 = vpop.permute.xlu1 %250  ;;  %v247_v13 = vpop.permute.xlu0 %246 }
  0x98   : > { %vm297_vm1 = vcmp.gt.f32.partialorder %v251_v12, 0.5  ;;  %vm296_vm5 = vcmp.gt.f32.partialorder %v247_v13, 0.5  ;;  %v223_v13 = vld [vmem:[%s905_s26 + $0x78] sm:$0xff] }
  0x99   : > { %v345_v36 = vsel %vm297_vm1, %v213_v29, -1e+30  ;;  %v344_v43 = vsel %vm296_vm5, %v212_v33, -1e+30 }
  0x9a   : > { %v357_v45 = vmax.f32 %v341_v42, %v345_v36  ;;  %v356_v55 = vmax.f32 %v340_v40, %v344_v43 }
  0x9b   : > { %v259_v14 = vpop.permute.xlu1 %258  ;;  %v255_v15 = vpop.permute.xlu0 %254 }
  0x9c   : > { %vm299_vm6 = vcmp.gt.f32.partialorder %v259_v14, 0.5  ;;  %vm298_vm7 = vcmp.gt.f32.partialorder %v255_v15, 0.5  ;;  %v222_v14 = vld [vmem:[%s905_s26 + $0x70] sm:$0xff] }
  0x9d   : > { %v347_v46 = vsel %vm299_vm6, %v215_v34, -1e+30  ;;  %v346_v49 = vsel %vm298_vm7, %v922_v37, -1e+30 }
  0x9e   : > { %v359_v59 = vmax.f32 %v343_v41, %v347_v46  ;;  %v358_v63 = vmax.f32 %v342_v35, %v346_v49 }
  0x9f   : > { %v390_v16 = vpop.permute.xlu1 %389  ;;  %v386_v17 = vpop.permute.xlu0 %385 }
  0xa0   : > { %vm448_vm8 = vcmp.gt.f32.partialorder %v390_v16, 0.5  ;;  %vm447_vm9 = vcmp.gt.f32.partialorder %v386_v17, 0.5 }
  0xa1   : > { %v932_v50 = vsel %vm448_vm8, %v209_v32, -1e+30  ;;  %v934_v53 = vsel %vm447_vm9, %v208_v30, -1e+30 }
  0xa3   : > { %v398_v18 = vpop.permute.xlu1 %397  ;;  %v394_v19 = vpop.permute.xlu0 %393 }
  0xa4   : > { %vm450_vm10 = vcmp.gt.f32.partialorder %v398_v18, 0.5  ;;  %vm449_vm11 = vcmp.gt.f32.partialorder %v394_v19, 0.5 }
  0xa5   : > { %v938_v56 = vsel %vm450_vm10, %v211_v31, -1e+30  ;;  %v941_v57 = vsel %vm449_vm11, %v210_v28, -1e+30 }
  0xa7   : > { %v406_v20 = vpop.permute.xlu1 %405  ;;  %v908_v21 = vpop.permute.xlu0 %401 }
  0xa8   : > { %vm452_vm12 = vcmp.gt.f32.partialorder %v406_v20, 0.5  ;;  %vm451_vm1 = vcmp.gt.f32.partialorder %v908_v21, 0.5 }
  0xa9   : > { %v500_v60 = vsel %vm452_vm12, %v213_v29, -1e+30  ;;  %v499_v5 = vsel %vm451_vm1, %v212_v33, -1e+30  ;;  %vm633_vm1 = vcmask (!%p713_p6), 25600  }
  0xaa   : > { %v512_v19 = vmax.f32 %v932_v50, %v500_v60  ;;  %v511_v20 = vmax.f32 %v934_v53, %v499_v5  ;;  %v377_v60 = vld [vmem:[#allocation2] sm:$0x1] }
  0xab   : > { %v910_v22 = vpop.permute.xlu1 %413  ;;  %v912_v23 = vpop.permute.xlu0 %409 }
  0xac   : > { %vm454_vm2 = vcmp.gt.f32.partialorder %v910_v22, 0.5  ;;  %vm453_vm3 = vcmp.gt.f32.partialorder %v912_v23, 0.5 }
  0xad   : > { %v502_v6 = vsel %vm454_vm2, %v215_v34, -1e+30 }
  0xae   : > { %v514_v28 = vmax.f32 %v938_v56, %v502_v6  ;;  %v540_v6 = vld [vmem:[%s1047_s2] sm:$0xff] (!%p713_p6) }
  0xaf   : > { %v267_v24 = vpop.permute.xlu1 %266  ;;  %v263_v25 = vpop.permute.xlu0 %262 }
  0xb0   : > { %vm301_vm13 = vcmp.gt.f32.partialorder %v267_v24, 0.5  ;;  %vm300_vm14 = vcmp.gt.f32.partialorder %v263_v25, 0.5  ;;  %v501_v24 = vsel %vm453_vm3, %v922_v37, -1e+30 }
  0xb1   : > { %v349_v61 = vsel %vm301_vm13, %v217_v44, -1e+30  ;;  %v348_v0 = vsel %vm300_vm14, %v216_v47, -1e+30  ;;  %v513_v23 = vmax.f32 %v941_v57, %v501_v24  ;;  %v550_v24 = vld [vmem:[%s1047_s2 + $0x50] sm:$0xff] (!%p713_p6) }
  0xb2   : > { %v361_v9 = vmax.f32 %v357_v45, %v349_v61  ;;  %v360_v10 = vmax.f32 %v356_v55, %v348_v0 }
  0xb3   : > { %v275_v26 = vpop.permute.xlu1 %274  ;;  %v271_v27 = vpop.permute.xlu0 %270 }
  0xb4   : > { %vm303_vm15 = vcmp.gt.f32.partialorder %v275_v26, 0.5  ;;  %vm302_vm0 = vcmp.gt.f32.partialorder %v271_v27, 0.5 }
  0xb5   : > { %v351_v1 = vsel %vm303_vm15, %v219_v48, -1e+30  ;;  %v350_v2 = vsel %vm302_vm0, %v218_v54, -1e+30  ;;  %vm858_vm0 = vmmov (!%p713_p6), 0  }
  0xb6   : > { %v363_v11 = vmax.f32 %v359_v59, %v351_v1  ;;  %v362_v12 = vmax.f32 %v358_v63, %v350_v2 }
  0xb7   : > { %v924_v38 = vpop.permute.xlu1 %421  ;;  %v926_v39 = vpop.permute.xlu0 %417 }
  0xb8   : > { %vm456_vm6 = vcmp.gt.f32.partialorder %v924_v38, 0.5  ;;  %vm455_vm7 = vcmp.gt.f32.partialorder %v926_v39, 0.5 }
  0xb9   : > { %v504_v25 = vsel %vm456_vm6, %v217_v44, -1e+30  ;;  %v503_v29 = vsel %vm455_vm7, %v216_v47, -1e+30 }
  0xba   : > { %v516_v36 = vmax.f32 %v512_v19, %v504_v25  ;;  %v515_v40 = vmax.f32 %v511_v20, %v503_v29  ;;  %v548_v20 = vld [vmem:[%s1047_s2 + $0x40] sm:$0xff] (!%p713_p6)  ;;  %v551_v25 = vld [vmem:[%s1047_s2 + $0x58] sm:$0xff] (!%p713_p6) }
  0xbb   : > { %v430_v51 = vpop.permute.xlu1 %429  ;;  %v426_v52 = vpop.permute.xlu0 %425 }
  0xbc   : > { %vm458_vm8 = vcmp.gt.f32.partialorder %v430_v51, 0.5  ;;  %vm457_vm9 = vcmp.gt.f32.partialorder %v426_v52, 0.5 }
  0xbd   : > { %v506_v30 = vsel %vm458_vm8, %v219_v48, -1e+30  ;;  %v505_v31 = vsel %vm457_vm9, %v218_v54, -1e+30 }
  0xbe   : > { %v518_v42 = vmax.f32 %v514_v28, %v506_v30  ;;  %v517_v39 = vmax.f32 %v513_v23, %v505_v31  ;;  %v553_v28 = vld [vmem:[%s1047_s2 + $0x68] sm:$0xff] (!%p713_p6)  ;;  %v554_v30 = vld [vmem:[%s1047_s2 + $0x70] sm:$0xff] (!%p713_p6)  ;;  %v555_v31 = vld [vmem:[%s1047_s2 + $0x78] sm:$0xff] (!%p713_p6) }
  0xbf   : > { %v283_v3 = vpop.permute.xlu1 %282  ;;  %v279_v4 = vpop.permute.xlu0 %278 }
  0xc0   : > { %vm305_vm4 = vcmp.gt.f32.partialorder %v283_v3, 0.5  ;;  %vm304_vm5 = vcmp.gt.f32.partialorder %v279_v4, 0.5  ;;  %v532_v3 = vld [vmem:[#allocation2 + $0x1] sm:$0x1] }
  0xc1   : > { %v353_v7 = vsel %vm305_vm4, %v221_v58, -1e+30  ;;  %v352_v8 = vsel %vm304_vm5, %v220_v62, -1e+30 }
  0xc2   : > { %v365_v17 = vmax.f32 %v361_v9, %v353_v7  ;;  %v364_v18 = vmax.f32 %v360_v10, %v352_v8  ;;  %v541_v7 = vld [vmem:[%s1047_s2 + $0x8] sm:$0xff] (!%p713_p6)  ;;  %v542_v8 = vld [vmem:[%s1047_s2 + $0x10] sm:$0xff] (!%p713_p6)  ;;  %v857_v9 = vmov (!%p713_p6), 0.0|0.0  }
  0xc3   : > { %v291_v15 = vpop.permute.xlu1 %290  ;;  %v287_v16 = vpop.permute.xlu0 %286  ;;  %771 = vmatprep.subr.bf16.mxu0 (!%p713_p6), %v857_v9  ;;  %v772_v10 = vpack.c.bf16 (!%p713_p6), %v541_v7, %v540_v6 }
  0xc4   : > { %vm307_vm10 = vcmp.gt.f32.partialorder %v291_v15, 0.5  ;;  %vm306_vm11 = vcmp.gt.f32.partialorder %v287_v16, 0.5  ;;  %v368_v34 = vmax.f32 %v364_v18, %v365_v17  ;;  %v545_v15 = vld [vmem:[%s1047_s2 + $0x28] sm:$0xff] (!%p713_p6)  ;;  %v546_v17 = vld [vmem:[%s1047_s2 + $0x30] sm:$0xff] (!%p713_p6)  ;;  %v547_v18 = vld [vmem:[%s1047_s2 + $0x38] sm:$0xff] (!%p713_p6) }
  0xc5   : > { %v355_v21 = vsel %vm307_vm10, %v223_v13, -1e+30  ;;  %v354_v22 = vsel %vm306_vm11, %v222_v14, -1e+30  ;;  %773 = vmatpush3.bf16.msra.mxu0 (!%p713_p6), %v772_v10  ;;  %v781_v19 = vpack.c.bf16 (!%p713_p6), %v547_v18, %v546_v17 }
  0xc6   : > { %v367_v26 = vmax.f32 %v363_v11, %v355_v21  ;;  %v366_v27 = vmax.f32 %v362_v12, %v354_v22  ;;  %v543_v11 = vld [vmem:[%s1047_s2 + $0x18] sm:$0xff] (!%p713_p6)  ;;  %v859_v12 = vmov (!%p713_p6), 0.0   ;;  %774 = vmatprep.subr.bf16.mxu0 (!%p713_p6), %v857_v9  ;;  %v549_v21 = vld [vmem:[%s1047_s2 + $0x48] sm:$0xff] (!%p713_p6) }
  0xc7   : > { %v438_v32 = vpop.permute.xlu1 %437  ;;  %v434_v33 = vpop.permute.xlu0 %433  ;;  %768 = vmatprep.mubr.msk.f32.mxu0 (!%p713_p6), %vm858_vm0, %v859_v12  ;;  %v784_v22 = vpack.c.bf16 (!%p713_p6), %v549_v21, %v548_v20 }
  0xc8   : > { %v369_v35 = vmax.f32 %v366_v27, %v367_v26  ;;  %vm460_vm12 = vcmp.gt.f32.partialorder %v438_v32, 0.5  ;;  %vm459_vm13 = vcmp.gt.f32.partialorder %v434_v33, 0.5  ;;  %v787_v26 = vpack.c.bf16 (!%p713_p6), %v551_v25, %v550_v24  ;;  %v552_v27 = vld [vmem:[%s1047_s2 + $0x60] sm:$0xff] (!%p713_p6) }
  0xc9   : > { %v508_v37 = vsel %vm460_vm12, %v221_v58, -1e+30  ;;  %v507_v38 = vsel %vm459_vm13, %v220_v62, -1e+30  ;;  %v790_v29 = vpack.c.bf16 (!%p713_p6), %v553_v28, %v552_v27  ;;  %v793_v32 = vpack.c.bf16 (!%p713_p6), %v555_v31, %v554_v30 }
  0xca   : > { %v370_v41 = vmax.f32 %v368_v34, %v369_v35  ;;  %v520_v43 = vmax.f32 %v516_v36, %v508_v37  ;;  %v519_v47 = vmax.f32 %v515_v40, %v507_v38  ;;  %v714_v34 = vld [vmem:[%s1048_s3] ss:$0 sm:$0xff] (!%p713_p6) }
  0xcb   : > { %v446_v44 = vpop.permute.xlu1 %445  ;;  %v442_v45 = vpop.permute.xlu0 %441 }
  0xcc   : > { %v371_v46 = vrot.slane %v370_v41, 4  ;;  %vm462_vm14 = vcmp.gt.f32.partialorder %v446_v44, 0.5  ;;  %vm461_vm15 = vcmp.gt.f32.partialorder %v442_v45, 0.5  ;;  %v523_v54 = vmax.f32 %v519_v47, %v520_v43 }
  0xcd   : > { %v510_v48 = vsel %vm462_vm14, %v223_v13, -1e+30  ;;  %v509_v49 = vsel %vm461_vm15, %v222_v14, -1e+30  ;;  %v775_v13 = vpack.c.bf16 (!%p713_p6), %v543_v11, %v542_v8  ;;  %v544_v14 = vld [vmem:[%s1047_s2 + $0x20] sm:$0xff] (!%p713_p6) }
  0xce   : > { %v372_v50 = vmax.f32 %v370_v41, %v371_v46  ;;  %v522_v51 = vmax.f32 %v518_v42, %v510_v48  ;;  %v521_v52 = vmax.f32 %v517_v39, %v509_v49  ;;  %v778_v16 = vpack.c.bf16 (!%p713_p6), %v545_v15, %v544_v14 }
  0xcf   : > { %776 = vmatpush3.bf16.msra.mxu0 (!%p713_p6), %v775_v13 }
  0xd0   : > { %v373_v53 = vrot.slane %v372_v50, 2  ;;  %v524_v55 = vmax.f32 %v521_v52, %v522_v51  ;;  %777 = vmatprep.subr.bf16.mxu0 (!%p713_p6), %v857_v9 }
  0xd2   : > { %v374_v56 = vmax.f32 %v372_v50, %v373_v53  ;;  %v525_v57 = vmax.f32 %v523_v54, %v524_v55 }
  0xd3   : > { %779 = vmatpush3.bf16.msra.mxu0 (!%p713_p6), %v778_v16 }
  0xd4   : > { %v375_v58 = vrot.slane %v374_v56, 1  ;;  %v526_v59 = vrot.slane %v525_v57, 4  ;;  %780 = vmatprep.subr.bf16.mxu0 (!%p713_p6), %v857_v9 }
  0xd6   : > { %v376_v61 = vmax.f32 %v374_v56, %v375_v58  ;;  %v527_v62 = vmax.f32 %v525_v57, %v526_v59 }
  0xd7   : > { %782 = vmatpush3.bf16.msra.mxu0 (!%p713_p6), %v781_v19 }
  0xd8   : > { %v378_v63 = vmax.f32 %v377_v60, %v376_v61  ;;  %v528_v0 = vrot.slane %v527_v62, 2  ;;  %783 = vmatprep.subr.bf16.mxu0 (!%p713_p6), %v857_v9 }
  0xda   : > { %379 = vst [vmem:[#allocation2] sm:$0x1] %v378_v63  ;;  %v529_v1 = vmax.f32 %v527_v62, %v528_v0 }
  0xdb   : > { %785 = vmatpush3.bf16.msra.mxu0 (!%p713_p6), %v784_v22 }
  0xdc   : > { %v530_v2 = vrot.slane %v529_v1, 1  ;;  %538 = sbr.rel (%p713_p6) target bundleno = 765 (0x2fd), region = 44  ;;  %786 = vmatprep.subr.bf16.mxu0 (!%p713_p6), %v857_v9 }
  0xde   : > { %v531_v4 = vmax.f32 %v529_v1, %v530_v2 }
  0xdf   : > { %788 = vmatpush3.bf16.msra.mxu0 (!%p713_p6), %v787_v26 }
  0xe0   : > { %v533_v5 = vmax.f32 %v532_v3, %v531_v4  ;;  %789 = vmatprep.subr.bf16.mxu0 (!%p713_p6), %v857_v9 }
  0xe2   : > { %534 = vst [vmem:[#allocation2 + $0x1] sm:$0x1] %v533_v5 }
  0xe3   : > { %791 = vmatpush3.bf16.msra.mxu0 %v790_v29 }
  0xe4   : > { %792 = vmatprep.subr.bf16.mxu0 %v857_v9 }
  0xe7   : > { %794 = vmatpush3.bf16.msra.mxu0 %v793_v32 }
  0xe9   : > { %v539_v33 = vld [vmem:[#allocation2] sm:$0x3] }
  0xea   : > { %769 = vmatmul.mubr.f32.vlgmr.msra.gmra.mrb[0].mxu0 %v539_v33 }
 0x1bd   : > { %v629_v35 = vpop.f32.mrb[0].mxu0 }
 0x1be   : > { %v630_v23 = vadd.f32 %v714_v34, %v629_v35  ;;  %v770_v36 = vpop.f32.mrb[1].mxu0 }
 0x1c0   : > { %v634_v37 = vsel %vm633_vm1, %v630_v23, -inf }
 0x1c1   : > { %635 = vmax.xlane.f32.xlu0 %v634_v37 }
 0x24e   : > { %v636_v38 = vpop.xlane.xlu0 %635 }
 0x24f   : > { %v637_v40 = vsub.f32 %v630_v23, %v636_v38 }
 0x251   : > { %v638_v41 = vmul.f32 1.442695, %v637_v40 }
 0x253   : > { %814 = vpow2.f32 %v638_v41 }
 0x25d   : > { %v815_v42 = vpop.eup %814 }
 0x25e   : > { %v640_v39 = vsel %vm633_vm1, %v815_v42, 0.0 }
 0x25f   : > { %641 = vadd.xlane.f32.xlu0 %v640_v39 }
 0x2ec   : > { %v642_v43 = vpop.xlane.xlu0 %641 }
 0x2ed   : > { %816 = vlog2.f32 %v642_v43 }
 0x2f7   : > { %v817_v44 = vpop.eup %816 }
 0x2f8   : > { %v644_v45 = vmul.f32 0.6931472, %v817_v44 }
 0x2fa   : > { %v645_v46 = vsub.f32 %v637_v40, %v644_v45 }
 0x2fc   : > { %646 = vst.msk [vmem:[#allocation3] sm:$0x3] %vm633_vm1, %v645_v46 }
 0x2fd PF: > { %p799_p7 = scmp.eq.s32.totalorder %s892_s16, 1  ;;  %s860_s11 = smov [#allocation3]  }
 0x2fe   : > { %s654_s12 = sshll.u32 %s860_s11, 4  ;;  %s655_s12 = int_to_ptr.vmem [resolvable:$true] %s654_s12 }
 0x2ff   : > { %s818_s13 = scalar_lea.vmem %s655_s12, 32  ;;  %p825_p11 = scmp.lt.s32.totalorder %s655_s12, %s655_s12 }
 0x300   : > { %p819_p8 = scmp.ne.s32.totalorder %s655_s12, %s818_s13  ;;  %p826_p12 = scmp.lt.s32.totalorder %s818_s13, %s818_s13 }
 0x302   : > { %p820_p9 = pnand %p819_p8, %p799_p7  ;;  %p827_p13 = por %p826_p12, %p825_p11 }
 0x304   : > { %p821_p10 = pneg %p820_p9 }
 0x306   : > { %p828_p0 = pnand %p827_p13, %p821_p10 }
 0x308   : > { %831 = shalt.err (!%p828_p0)
}
 0x309   : > { %s832_s18 = scalar_lea.hbm %s1049_s4, 32 }
 0x30a   : > { %p833_p1 = scmp.ne.s32.totalorder %s1049_s4, %s832_s18  ;;  %p838_p4 = scmp.lt.u32.totalorder %s832_s18, %s1049_s4 }
 0x30c   : > { %p834_p2 = pnand %p833_p1, %p799_p7 }
 0x30e   : > { %p835_p3 = pneg %p834_p2 }
 0x310   : > { %p840_p5 = pnand %p838_p4, %p835_p3 }
 0x312   : > { %843 = shalt.err (!%p840_p5)
}
 0x313   : > { %796 = dma.vmem_to_hbm [thread:$0]  (%p799_p7), %s655_s12, 32, %s1049_s4, [#allocation4]  }
 0x314   : > { %849 = dma.done.wait (%p799_p7), [#allocation4], 32  }
 0x315   : > { %851 = vsyncadd (%p799_p7), [#allocation4], 4294967264 }
 0x316 PF: > { %s15_s15 = sadd.s32 1, %s854_s15  }
 0x317   : > { %p12_p6 = scmp.ge.s32.totalorder %s15_s15, 4  }
 0x319   :  { %14 = sbr.rel (!%p12_p6) target bundleno = 1 (0x1), region = 74 }
 0x320   :  { %667 = vsyncpa [#allocation4], 1 }
 0x321   :  { %669 = vsyncpa [#allocation4 + $0x1], 1 }

</bundles_post_ra>
